<compile_context>
chip_gen: v6e
topology: v6e:2x2x1
jax: 0.10.0
libtpu: 0.0.40
codegen_flags: <defaults>
</compile_context>

<pallas_src>
import jax
import jax.numpy as jnp
import numpy as np
from jax.experimental import pallas as pl
from jax.experimental.pallas import tpu as pltpu

EPS = 1e-5                    # InstanceNorm2d default eps (affine=False, biased variance)
MATMUL_DTYPE = jnp.bfloat16   # MXU operand dtype (bf16-native); accumulate in f32


# ----------------------------- kernel helpers (traced inside the kernel) -----------------

def _instance_norm(z):
    # z: (H*W, C) f32; normalize over spatial rows per channel.  Single fused pass:
    # biased variance via E[z^2] - E[z]^2 (clamped), eps = 1e-5.
    mean = jnp.mean(z, axis=0, keepdims=True)
    mean_sq = jnp.mean(z * z, axis=0, keepdims=True)
    var = jnp.maximum(mean_sq - mean * mean, 0.0)
    return (z - mean) * jax.lax.rsqrt(var + EPS)


def _conv3x3_flat(y, w_ref, first_col, last_col, H, W, C):
    """3x3 'same' conv with ReflectionPad2d(1) semantics on a flattened (H*W, C) image.

    y:      (H*W, C) float, row-major spatial rows, channels on lanes (cast to bf16 here).
    w_ref:  (3, 3C, C) bf16 ref; w_ref[dy] rows ordered (dx, cin).
    first_col / last_col: ((H+2)*W, C) bool masks for w == 0 / w == W-1 (hoisted by caller).
    Returns (H*W, C) f32.  No bias: it cancels exactly under the following InstanceNorm.
    """
    M = H * W
    Mh = (H + 2) * W

    # Cast once, up front: every temporary below is bf16 (half the copy/VMEM bytes).
    yb = y.astype(MATMUL_DTYPE)

    # Row (H) reflection pad: prepend original row 1, append original row H-2.
    # Pure leading-axis concat -> no lane/sublane shuffle.
    yh = jnp.concatenate([yb[W:2 * W], yb, yb[(H - 2) * W:(H - 1) * W]], axis=0)  # (Mh, C)

    # The two +-1 row shifts (the only sublane-offset copies), built once, reused by all
    # three row taps.  Junk boundary rows (k=0 of sh_m1, k=Mh-1 of sh_p1) are always
    # overwritten by the column fix-up below.
    sh_m1 = jnp.concatenate([yh[0:1], yh[:Mh - 1]], axis=0)   # [k] = yh[k-1]
    sh_p1 = jnp.concatenate([yh[1:], yh[Mh - 1:]], axis=0)    # [k] = yh[k+1]

    # Column (W) reflection as a boundary fix-up: w==0 needs column 1 (= sh_p1),
    # w==W-1 needs column W-2 (= sh_m1).  No (H+2, W+2, C) padded copy is ever built.
    slab0 = jnp.where(first_col, sh_p1, sh_m1)   # dx = 0  ->  y[h, w-1] (reflected)
    slab2 = jnp.where(last_col, sh_m1, sh_p1)    # dx = 2  ->  y[h, w+1] (reflected)

    # One (Mh, 3C) slab, lanes ordered (dx, cin).  The per-dy patches are leading-axis
    # slices of it (no further copies), so the conv is 3 MXU matmuls with K = 3C.
    slab = jnp.concatenate([slab0, yh, slab2], axis=-1)       # (Mh, 3C) bf16

    acc = jnp.dot(slab[0:M], w_ref[0], preferred_element_type=jnp.float32)
    acc = acc + jnp.dot(slab[W:W + M], w_ref[1], preferred_element_type=jnp.float32)
    acc = acc + jnp.dot(slab[2 * W:2 * W + M], w_ref[2], preferred_element_type=jnp.float32)
    return acc                                                # (M, C) f32


# ----------------------------- the Pallas kernel + wrapper -------------------------------

def residual_block(x, w1, b1, w2, b2):
    """x: (N, H, W, C) f32; w*: (3, 3, C, C) HWIO; b*: (1, C) f32 (unused: see below)."""
    del b1, b2  # per-channel conv bias is cancelled exactly by affine=False InstanceNorm
    N, H, W, C = x.shape
    assert H >= 2 and W >= 2, "ReflectionPad2d(1) requires H, W >= 2"
    M = H * W
    Mh = (H + 2) * W

    def kernel(x_ref, w1_ref, w2_ref, o_ref):
        # Column-boundary masks, built once and reused by both convs (hoisted broadcast).
        col = jax.lax.broadcasted_iota(jnp.int32, (W, C), 0)             # (W, C): value = w
        col = jnp.broadcast_to(col[None], (H + 2, W, C)).reshape(Mh, C)
        first_col = col == 0
        last_col = col == W - 1

        # pad -> conv1 -> InstanceNorm -> ReLU
        h = _conv3x3_flat(x_ref[0], w1_ref, first_col, last_col, H, W, C)
        h = jnp.maximum(_instance_norm(h), 0.0)
        # pad -> conv2 -> InstanceNorm
        h = _conv3x3_flat(h, w2_ref, first_col, last_col, H, W, C)
        h = _instance_norm(h)

        # residual add: re-read the resident input block (no long-lived f32 copy of x).
        # NOTE: for C < 128 this store is lane-masked; it is lane-dense for C % 128 == 0.
        o_ref[0] = (x_ref[0] + h).astype(o_ref.dtype)

    x2d = x.reshape(N, M, C)                         # free metadata reshape at JAX level
    # HWIO (3,3,C,C) -> (3, 3C, C): first axis dy; rows of each block ordered (dx, cin),
    # matching the slab lane ordering.  Cast to bf16 once here (not per grid step).
    w1f = w1.reshape(3, 3 * C, C).astype(MATMUL_DTYPE)
    w2f = w2.reshape(3, 3 * C, C).astype(MATMUL_DTYPE)

    # VMEM budget from buffer arithmetic (1.5x margin), clamped to v7x's 64 MiB physical.
    bf16_b, f32_b = 2, 4
    io_bytes = 2 * (2 * M * C * f32_b)               # double-buffered input + output blocks
    w_bytes = 2 * (2 * 9 * C * C * bf16_b)           # two bf16 weight tensors, double-buffered
    tmp_bytes = (8 * Mh * C * bf16_b                 # yh, sh_m1, sh_p1, slab0/2, (Mh,3C) slab
                 + 2 * Mh * C * f32_b                # iota + boolean masks
                 + 4 * M * C * f32_b)                # f32 acc / h / norm temporaries
    vmem_limit = int(min(max(1.5 * (io_bytes + w_bytes + tmp_bytes), 32 * 1024 * 1024),
                         64 * 1024 * 1024))

    out = pl.pallas_call(
        kernel,
        out_shape=jax.ShapeDtypeStruct((N, M, C), x.dtype),
        grid_spec=pltpu.PrefetchScalarGridSpec(
            num_scalar_prefetch=0,
            grid=(N,),
            in_specs=[
                pl.BlockSpec((1, M, C), lambda n: (n, 0, 0)),
                pl.BlockSpec((3, 3 * C, C), lambda n: (0, 0, 0)),
                pl.BlockSpec((3, 3 * C, C), lambda n: (0, 0, 0)),
            ],
            out_specs=pl.BlockSpec((1, M, C), lambda n: (n, 0, 0)),
        ),
        compiler_params=pltpu.CompilerParams(
            # Batch elements are fully independent -> shard the grid over v7x's 2 TCs.
            dimension_semantics=("parallel",),
            vmem_limit_bytes=vmem_limit,
        ),
    )(x2d, w1f, w2f)

    return out.reshape(N, H, W, C)


# ----------------------------- pure-JAX reference (for verification) ---------------------

def residual_block_ref(x, w1, b1, w2, b2):
    def pad(y):
        return jnp.pad(y, ((0, 0), (1, 1), (1, 1), (0, 0)), mode="reflect")

    def conv(y, w, b):
        out = jax.lax.conv_general_dilated(
            y, w, window_strides=(1, 1), padding="VALID",
            dimension_numbers=("NHWC", "HWIO", "NHWC"))
        return out + b.reshape(1, 1, 1, -1)

    def inorm(y):
        m = y.mean(axis=(1, 2), keepdims=True)
        v = ((y - m) ** 2).mean(axis=(1, 2), keepdims=True)
        return (y - m) * jax.lax.rsqrt(v + EPS)

    h = jax.nn.relu(inorm(conv(pad(x), w1, b1)))
    h = inorm(conv(pad(h), w2, b2))
    return x + h


# ----------------------------- main -------------------------------------------------------

if __name__ == "__main__":
    key = jax.random.PRNGKey(0)

    def run_case(N, H, W, C, rtol, atol):
        kx, kw1, kb1, kw2, kb2 = jax.random.split(jax.random.fold_in(key, C), 5)
        x = jax.random.normal(kx, (N, H, W, C), dtype=jnp.float32)
        # Conv2d(C, C, 3) parameters: weights in HWIO, biases as (1, C).
        # (the reference applies the biases; the kernel drops them because the following
        #  affine=False InstanceNorm cancels a per-channel constant exactly)
        w1 = jax.random.normal(kw1, (3, 3, C, C), dtype=jnp.float32) * 0.1
        b1 = jax.random.normal(kb1, (1, C), dtype=jnp.float32) * 0.1
        w2 = jax.random.normal(kw2, (3, 3, C, C), dtype=jnp.float32) * 0.1
        b2 = jax.random.normal(kb2, (1, C), dtype=jnp.float32) * 0.1

        out = jax.block_until_ready(residual_block(x, w1, b1, w2, b2))
        ref = jax.block_until_ready(residual_block_ref(x, w1, b1, w2, b2))
        # bf16 MXU operands (f32 accumulate + f32 norms/residual) -> looser tolerance.
        np.testing.assert_allclose(np.asarray(out), np.asarray(ref), rtol=rtol, atol=atol)

    # Toy shape matching ResidualBlock(in_features=4) on a 16x16 image, batch 2.
    run_case(2, 16, 16, 4, rtol=2e-2, atol=2e-2)
    # Lane-dense path (C = 128, W multiple of 16) — the layout the perf work targets.
    run_case(2, 16, 16, 128, rtol=2e-2, atol=3e-2)

    print("KERNEL_OK")
</pallas_src>

<mosaic_0001>
module attributes {stable_mosaic.version = 11 : i64} {
  func.func @kernel(%arg0: i32, %arg1: memref<1x256x4xf32, #tpu.memory_space<vmem>>, %arg2: memref<3x12x4xbf16, #tpu.memory_space<vmem>>, %arg3: memref<3x12x4xbf16, #tpu.memory_space<vmem>>, %arg4: memref<1x256x4xf32, #tpu.memory_space<vmem>>) attributes {dimension_semantics = [#tpu.dimension_semantics<parallel>], iteration_bounds = array<i64: 2>, scalar_prefetch = 0 : i64, scratch_operands = 0 : i64, tpu.core_type = #tpu.core_type<tc>, window_params = [{transform_indices = @transform_0, window_bounds = array<i64: 1, 256, 4>}, {pipeline_mode = #tpu.pipeline_mode<synchronous>, transform_indices = @transform_1, window_bounds = array<i64: 3, 12, 4>}, {pipeline_mode = #tpu.pipeline_mode<synchronous>, transform_indices = @transform_2, window_bounds = array<i64: 3, 12, 4>}, {transform_indices = @transform_3, window_bounds = array<i64: 1, 256, 4>}]} {
    %0 = tpu.iota {dimensions = array<i32: 0>} : vector<16x4xi32>
    %1 = vector.shape_cast %0 : vector<16x4xi32> to vector<1x16x4xi32>
    %2 = vector.shape_cast %1 : vector<1x16x4xi32> to vector<1x16x4xi32>
    %3 = vector.broadcast %2 : vector<1x16x4xi32> to vector<18x16x4xi32>
    %4 = vector.shape_cast %3 : vector<18x16x4xi32> to vector<288x4xi32>
    %c0_i32 = arith.constant 0 : i32
    %5 = vector.broadcast %c0_i32 : i32 to vector<288x4xi32>
    %6 = arith.cmpi eq, %4, %5 : vector<288x4xi32>
    %c15_i32 = arith.constant 15 : i32
    %7 = vector.broadcast %c15_i32 : i32 to vector<288x4xi32>
    %8 = arith.cmpi eq, %4, %7 : vector<288x4xi32>
    %c0 = arith.constant 0 : index
    %c0_0 = arith.constant 0 : index
    %c0_1 = arith.constant 0 : index
    %9 = vector.load %arg1[%c0, %c0_0, %c0_1] : memref<1x256x4xf32, #tpu.memory_space<vmem>>, vector<1x256x4xf32>
    %10 = vector.shape_cast %9 : vector<1x256x4xf32> to vector<256x4xf32>
    %11 = arith.truncf %10 : vector<256x4xf32> to vector<256x4xbf16>
    %12 = vector.extract_strided_slice %11 {offsets = [16, 0], sizes = [16, 4], strides = [1, 1]} : vector<256x4xbf16> to vector<16x4xbf16>
    %13 = vector.extract_strided_slice %11 {offsets = [224, 0], sizes = [16, 4], strides = [1, 1]} : vector<256x4xbf16> to vector<16x4xbf16>
    %14 = tpu.concatenate %12, %11, %13 in 0 : vector<16x4xbf16>, vector<256x4xbf16>, vector<16x4xbf16> -> vector<288x4xbf16>
    %15 = vector.extract_strided_slice %14 {offsets = [0, 0], sizes = [1, 4], strides = [1, 1]} : vector<288x4xbf16> to vector<1x4xbf16>
    %16 = vector.extract_strided_slice %14 {offsets = [0, 0], sizes = [287, 4], strides = [1, 1]} : vector<288x4xbf16> to vector<287x4xbf16>
    %17 = tpu.concatenate %15, %16 in 0 : vector<1x4xbf16>, vector<287x4xbf16> -> vector<288x4xbf16>
    %18 = vector.extract_strided_slice %14 {offsets = [1, 0], sizes = [287, 4], strides = [1, 1]} : vector<288x4xbf16> to vector<287x4xbf16>
    %19 = vector.extract_strided_slice %14 {offsets = [287, 0], sizes = [1, 4], strides = [1, 1]} : vector<288x4xbf16> to vector<1x4xbf16>
    %20 = tpu.concatenate %18, %19 in 0 : vector<287x4xbf16>, vector<1x4xbf16> -> vector<288x4xbf16>
    %21 = arith.select %6, %20, %17 : vector<288x4xi1>, vector<288x4xbf16>
    %22 = arith.select %8, %17, %20 : vector<288x4xi1>, vector<288x4xbf16>
    %23 = tpu.concatenate %21, %14, %22 in 1 : vector<288x4xbf16>, vector<288x4xbf16>, vector<288x4xbf16> -> vector<288x12xbf16>
    %24 = vector.extract_strided_slice %23 {offsets = [0, 0], sizes = [256, 12], strides = [1, 1]} : vector<288x12xbf16> to vector<256x12xbf16>
    %c0_2 = arith.constant 0 : index
    %c0_3 = arith.constant 0 : index
    %c0_4 = arith.constant 0 : index
    %25 = vector.load %arg2[%c0_2, %c0_3, %c0_4] : memref<3x12x4xbf16, #tpu.memory_space<vmem>>, vector<1x12x4xbf16>
    %26 = vector.shape_cast %25 : vector<1x12x4xbf16> to vector<12x4xbf16>
    %cst = arith.constant dense<0.000000e+00> : vector<256x4xf32>
    %27 = tpu.matmul %24, %26, %cst {dimension_numbers = #tpu.dot_dimension_numbers<[1], [0], [0], [1], [0, 0, 1, 1], [], []>} : vector<256x12xbf16>, vector<12x4xbf16>, vector<256x4xf32> -> vector<256x4xf32>
    %28 = vector.extract_strided_slice %23 {offsets = [16, 0], sizes = [256, 12], strides = [1, 1]} : vector<288x12xbf16> to vector<256x12xbf16>
    %c1 = arith.constant 1 : index
    %c0_5 = arith.constant 0 : index
    %c0_6 = arith.constant 0 : index
    %29 = vector.load %arg2[%c1, %c0_5, %c0_6] : memref<3x12x4xbf16, #tpu.memory_space<vmem>>, vector<1x12x4xbf16>
    %30 = vector.shape_cast %29 : vector<1x12x4xbf16> to vector<12x4xbf16>
    %cst_7 = arith.constant dense<0.000000e+00> : vector<256x4xf32>
    %31 = tpu.matmul %28, %30, %cst_7 {dimension_numbers = #tpu.dot_dimension_numbers<[1], [0], [0], [1], [0, 0, 1, 1], [], []>} : vector<256x12xbf16>, vector<12x4xbf16>, vector<256x4xf32> -> vector<256x4xf32>
    %32 = arith.addf %27, %31 : vector<256x4xf32>
    %33 = vector.extract_strided_slice %23 {offsets = [32, 0], sizes = [256, 12], strides = [1, 1]} : vector<288x12xbf16> to vector<256x12xbf16>
    %c2 = arith.constant 2 : index
    %c0_8 = arith.constant 0 : index
    %c0_9 = arith.constant 0 : index
    %34 = vector.load %arg2[%c2, %c0_8, %c0_9] : memref<3x12x4xbf16, #tpu.memory_space<vmem>>, vector<1x12x4xbf16>
    %35 = vector.shape_cast %34 : vector<1x12x4xbf16> to vector<12x4xbf16>
    %cst_10 = arith.constant dense<0.000000e+00> : vector<256x4xf32>
    %36 = tpu.matmul %33, %35, %cst_10 {dimension_numbers = #tpu.dot_dimension_numbers<[1], [0], [0], [1], [0, 0, 1, 1], [], []>} : vector<256x12xbf16>, vector<12x4xbf16>, vector<256x4xf32> -> vector<256x4xf32>
    %37 = arith.addf %32, %36 : vector<256x4xf32>
    %cst_11 = arith.constant dense<0.000000e+00> : vector<4xf32>
    %38 = vector.multi_reduction <add>, %37, %cst_11 [0] : vector<256x4xf32> to vector<4xf32>
    %39 = vector.shape_cast %38 : vector<4xf32> to vector<1x4xf32>
    %cst_12 = arith.constant 2.560000e+02 : f32
    %40 = vector.broadcast %cst_12 : f32 to vector<1x4xf32>
    %41 = arith.divf %39, %40 : vector<1x4xf32>
    %42 = arith.mulf %37, %37 : vector<256x4xf32>
    %cst_13 = arith.constant dense<0.000000e+00> : vector<4xf32>
    %43 = vector.multi_reduction <add>, %42, %cst_13 [0] : vector<256x4xf32> to vector<4xf32>
    %44 = vector.shape_cast %43 : vector<4xf32> to vector<1x4xf32>
    %cst_14 = arith.constant 2.560000e+02 : f32
    %45 = vector.broadcast %cst_14 : f32 to vector<1x4xf32>
    %46 = arith.divf %44, %45 : vector<1x4xf32>
    %47 = arith.mulf %41, %41 : vector<1x4xf32>
    %48 = arith.subf %46, %47 : vector<1x4xf32>
    %cst_15 = arith.constant 0.000000e+00 : f32
    %49 = vector.broadcast %cst_15 : f32 to vector<1x4xf32>
    %50 = arith.maximumf %48, %49 : vector<1x4xf32>
    %51 = vector.broadcast %41 : vector<1x4xf32> to vector<256x4xf32>
    %52 = arith.subf %37, %51 : vector<256x4xf32>
    %cst_16 = arith.constant 9.99999974E-6 : f32
    %53 = vector.broadcast %cst_16 : f32 to vector<1x4xf32>
    %54 = arith.addf %50, %53 : vector<1x4xf32>
    %55 = math.rsqrt %54 : vector<1x4xf32>
    %56 = vector.broadcast %55 : vector<1x4xf32> to vector<256x4xf32>
    %57 = arith.mulf %52, %56 : vector<256x4xf32>
    %cst_17 = arith.constant 0.000000e+00 : f32
    %58 = vector.broadcast %cst_17 : f32 to vector<256x4xf32>
    %59 = arith.maximumf %57, %58 : vector<256x4xf32>
    %60 = arith.truncf %59 : vector<256x4xf32> to vector<256x4xbf16>
    %61 = vector.extract_strided_slice %60 {offsets = [16, 0], sizes = [16, 4], strides = [1, 1]} : vector<256x4xbf16> to vector<16x4xbf16>
    %62 = vector.extract_strided_slice %60 {offsets = [224, 0], sizes = [16, 4], strides = [1, 1]} : vector<256x4xbf16> to vector<16x4xbf16>
    %63 = tpu.concatenate %61, %60, %62 in 0 : vector<16x4xbf16>, vector<256x4xbf16>, vector<16x4xbf16> -> vector<288x4xbf16>
    %64 = vector.extract_strided_slice %63 {offsets = [0, 0], sizes = [1, 4], strides = [1, 1]} : vector<288x4xbf16> to vector<1x4xbf16>
    %65 = vector.extract_strided_slice %63 {offsets = [0, 0], sizes = [287, 4], strides = [1, 1]} : vector<288x4xbf16> to vector<287x4xbf16>
    %66 = tpu.concatenate %64, %65 in 0 : vector<1x4xbf16>, vector<287x4xbf16> -> vector<288x4xbf16>
    %67 = vector.extract_strided_slice %63 {offsets = [1, 0], sizes = [287, 4], strides = [1, 1]} : vector<288x4xbf16> to vector<287x4xbf16>
    %68 = vector.extract_strided_slice %63 {offsets = [287, 0], sizes = [1, 4], strides = [1, 1]} : vector<288x4xbf16> to vector<1x4xbf16>
    %69 = tpu.concatenate %67, %68 in 0 : vector<287x4xbf16>, vector<1x4xbf16> -> vector<288x4xbf16>
    %70 = arith.select %6, %69, %66 : vector<288x4xi1>, vector<288x4xbf16>
    %71 = arith.select %8, %66, %69 : vector<288x4xi1>, vector<288x4xbf16>
    %72 = tpu.concatenate %70, %63, %71 in 1 : vector<288x4xbf16>, vector<288x4xbf16>, vector<288x4xbf16> -> vector<288x12xbf16>
    %73 = vector.extract_strided_slice %72 {offsets = [0, 0], sizes = [256, 12], strides = [1, 1]} : vector<288x12xbf16> to vector<256x12xbf16>
    %c0_18 = arith.constant 0 : index
    %c0_19 = arith.constant 0 : index
    %c0_20 = arith.constant 0 : index
    %74 = vector.load %arg3[%c0_18, %c0_19, %c0_20] : memref<3x12x4xbf16, #tpu.memory_space<vmem>>, vector<1x12x4xbf16>
    %75 = vector.shape_cast %74 : vector<1x12x4xbf16> to vector<12x4xbf16>
    %cst_21 = arith.constant dense<0.000000e+00> : vector<256x4xf32>
    %76 = tpu.matmul %73, %75, %cst_21 {dimension_numbers = #tpu.dot_dimension_numbers<[1], [0], [0], [1], [0, 0, 1, 1], [], []>} : vector<256x12xbf16>, vector<12x4xbf16>, vector<256x4xf32> -> vector<256x4xf32>
    %77 = vector.extract_strided_slice %72 {offsets = [16, 0], sizes = [256, 12], strides = [1, 1]} : vector<288x12xbf16> to vector<256x12xbf16>
    %c1_22 = arith.constant 1 : index
    %c0_23 = arith.constant 0 : index
    %c0_24 = arith.constant 0 : index
    %78 = vector.load %arg3[%c1_22, %c0_23, %c0_24] : memref<3x12x4xbf16, #tpu.memory_space<vmem>>, vector<1x12x4xbf16>
    %79 = vector.shape_cast %78 : vector<1x12x4xbf16> to vector<12x4xbf16>
    %cst_25 = arith.constant dense<0.000000e+00> : vector<256x4xf32>
    %80 = tpu.matmul %77, %79, %cst_25 {dimension_numbers = #tpu.dot_dimension_numbers<[1], [0], [0], [1], [0, 0, 1, 1], [], []>} : vector<256x12xbf16>, vector<12x4xbf16>, vector<256x4xf32> -> vector<256x4xf32>
    %81 = arith.addf %76, %80 : vector<256x4xf32>
    %82 = vector.extract_strided_slice %72 {offsets = [32, 0], sizes = [256, 12], strides = [1, 1]} : vector<288x12xbf16> to vector<256x12xbf16>
    %c2_26 = arith.constant 2 : index
    %c0_27 = arith.constant 0 : index
    %c0_28 = arith.constant 0 : index
    %83 = vector.load %arg3[%c2_26, %c0_27, %c0_28] : memref<3x12x4xbf16, #tpu.memory_space<vmem>>, vector<1x12x4xbf16>
    %84 = vector.shape_cast %83 : vector<1x12x4xbf16> to vector<12x4xbf16>
    %cst_29 = arith.constant dense<0.000000e+00> : vector<256x4xf32>
    %85 = tpu.matmul %82, %84, %cst_29 {dimension_numbers = #tpu.dot_dimension_numbers<[1], [0], [0], [1], [0, 0, 1, 1], [], []>} : vector<256x12xbf16>, vector<12x4xbf16>, vector<256x4xf32> -> vector<256x4xf32>
    %86 = arith.addf %81, %85 : vector<256x4xf32>
    %cst_30 = arith.constant dense<0.000000e+00> : vector<4xf32>
    %87 = vector.multi_reduction <add>, %86, %cst_30 [0] : vector<256x4xf32> to vector<4xf32>
    %88 = vector.shape_cast %87 : vector<4xf32> to vector<1x4xf32>
    %cst_31 = arith.constant 2.560000e+02 : f32
    %89 = vector.broadcast %cst_31 : f32 to vector<1x4xf32>
    %90 = arith.divf %88, %89 : vector<1x4xf32>
    %91 = arith.mulf %86, %86 : vector<256x4xf32>
    %cst_32 = arith.constant dense<0.000000e+00> : vector<4xf32>
    %92 = vector.multi_reduction <add>, %91, %cst_32 [0] : vector<256x4xf32> to vector<4xf32>
    %93 = vector.shape_cast %92 : vector<4xf32> to vector<1x4xf32>
    %cst_33 = arith.constant 2.560000e+02 : f32
    %94 = vector.broadcast %cst_33 : f32 to vector<1x4xf32>
    %95 = arith.divf %93, %94 : vector<1x4xf32>
    %96 = arith.mulf %90, %90 : vector<1x4xf32>
    %97 = arith.subf %95, %96 : vector<1x4xf32>
    %cst_34 = arith.constant 0.000000e+00 : f32
    %98 = vector.broadcast %cst_34 : f32 to vector<1x4xf32>
    %99 = arith.maximumf %97, %98 : vector<1x4xf32>
    %100 = vector.broadcast %90 : vector<1x4xf32> to vector<256x4xf32>
    %101 = arith.subf %86, %100 : vector<256x4xf32>
    %cst_35 = arith.constant 9.99999974E-6 : f32
    %102 = vector.broadcast %cst_35 : f32 to vector<1x4xf32>
    %103 = arith.addf %99, %102 : vector<1x4xf32>
    %104 = math.rsqrt %103 : vector<1x4xf32>
    %105 = vector.broadcast %104 : vector<1x4xf32> to vector<256x4xf32>
    %106 = arith.mulf %101, %105 : vector<256x4xf32>
    %c0_36 = arith.constant 0 : index
    %c0_37 = arith.constant 0 : index
    %c0_38 = arith.constant 0 : index
    %107 = vector.load %arg1[%c0_36, %c0_37, %c0_38] : memref<1x256x4xf32, #tpu.memory_space<vmem>>, vector<1x256x4xf32>
    %108 = vector.shape_cast %107 : vector<1x256x4xf32> to vector<256x4xf32>
    %109 = arith.addf %108, %106 : vector<256x4xf32>
    %c0_39 = arith.constant 0 : index
    %c0_40 = arith.constant 0 : index
    %c0_41 = arith.constant 0 : index
    %110 = vector.load %arg4[%c0_39, %c0_40, %c0_41] : memref<1x256x4xf32, #tpu.memory_space<vmem>>, vector<1x256x4xf32>
    %111 = vector.shape_cast %110 : vector<1x256x4xf32> to vector<256x4xf32>
    %112 = vector.shape_cast %109 : vector<256x4xf32> to vector<1x256x4xf32>
    tpu.vector_store %arg4[%c0_39, %c0_40, %c0_41], %112 {strides = array<i32>} : memref<1x256x4xf32, #tpu.memory_space<vmem>>, vector<1x256x4xf32>,
    return
  }
  func.func @transform_0(%arg0: i32) -> (i32, i32, i32) {
    %c0_i32 = arith.constant 0 : i32
    %c0_i32_0 = arith.constant 0 : i32
    %c0_i32_1 = arith.constant 0 : i32
    return %arg0, %c0_i32, %c0_i32_0 : i32, i32, i32
  }
  func.func @transform_1(%arg0: i32) -> (i32, i32, i32) {
    %c0_i32 = arith.constant 0 : i32
    %c0_i32_0 = arith.constant 0 : i32
    %c0_i32_1 = arith.constant 0 : i32
    %c0_i32_2 = arith.constant 0 : i32
    return %c0_i32, %c0_i32_0, %c0_i32_1 : i32, i32, i32
  }
  func.func @transform_2(%arg0: i32) -> (i32, i32, i32) {
    %c0_i32 = arith.constant 0 : i32
    %c0_i32_0 = arith.constant 0 : i32
    %c0_i32_1 = arith.constant 0 : i32
    %c0_i32_2 = arith.constant 0 : i32
    return %c0_i32, %c0_i32_0, %c0_i32_1 : i32, i32, i32
  }
  func.func @transform_3(%arg0: i32) -> (i32, i32, i32) {
    %c0_i32 = arith.constant 0 : i32
    %c0_i32_0 = arith.constant 0 : i32
    %c0_i32_1 = arith.constant 0 : i32
    return %arg0, %c0_i32, %c0_i32_0 : i32, i32, i32
  }
}

</mosaic_0001>

<bundles_post_ra>
// kernel: tpu_custom_call.1
= control target key start
LH: loop header
LB: loop body
LE: loop exit
PB: predicated region body
PF: predicated region fallthrough
CT: control target
= control target key end

     0   :  { %s3478_s12 = smov 0   ;;  %s5679_s0 = inlined_call_operand.vmem [shape: f32[2,256,4], index: 0, kind: input, shape index: {}]   ;;  %s5680_s1 = inlined_call_operand.vmem [shape: bf16[3,12,4], index: 1, kind: input, shape index: {}]   ;;  %s5681_s2 = inlined_call_operand.vmem [shape: bf16[3,12,4], index: 2, kind: input, shape index: {}]   ;;  %s5682_s3 = inlined_call_operand.vmem [shape: f32[2,256,4], index: 3, kind: output, shape index: {}]  }
   0x1 LB: > { %s2955_s13 = sadd.s32 4294967295, %s3452_s12   ;;  %p2959_p0 = scmp.ge.s32.totalorder %s3452_s12, 1  ;;  %s3452_s12 = sphi %s3478_s12, %s13_s12  }
   0x2   : > { %p137_p1 = scmp.lt.s32.totalorder %s3452_s12, 3 }
   0x4   : > { %p138_p2 = pnand %p2959_p0, %p137_p1 }
   0x6   : > { %141 = sbr.rel (%p138_p2) target bundleno = 1038 (0x40e), region = 32 }
   0xb   : > { %p161_p3 = scmp.lt.s32.totalorder %s2955_s13, 1  ;;  %v174_v0 = vlaneseq  ;;  %vm3454_vm0 = vmmov 0   ;;  %v3404_v3 = vld [vmem:[%s5680_s1 + $0x8] sm:$0x3f]   ;;  %vm738_vm3 = vcmask 1045504   ;;  %v3455_v9 = vmov 0  }
   0xc   : > { %vm3488_vm1 = vmpackc.low %vm3454_vm0, %vm3454_vm0  ;;  %3386 = vmatprep.subr.msk.bf16.mxu0 %vm738_vm3, %v3404_v3  ;;  %v740_v5 = vsel %vm738_vm3, %v3404_v3, 0  ;;  %vm229_vm6 = vsmask.f32 256  ;;  %s3456_s20 = smov 4   ;;  %vm380_vm8 = vsmask.f32 7424 }
   0xd   : > { %s5704_s13 = smov (!%p161_p3, %s2955_s13), 1  ;;  %v175_v1 = vshrl.u32 %v174_v0, 7  ;;  %v3512_v11 = vsel %vm3488_vm1, 65537, %v3455_v9  ;;  %3183 = vmatpush3.bf16.msra.mxu0 %v740_v5  ;;  %s3457_s21 = smov 8   ;;  %vm377_vm11 = vcmask 1040384   ;;  %vm448_vm12 = vcmask 1047552  }
   0xe   : > { %s3078_s16 = sshll.u32 %s5704_s13, 8  ;;  %vm3767_vm13 = vmand %vm377_vm11, %vm229_vm6  ;;  %vm605_vm15 = vcmask 31744   ;;  %vm658_vm0 = vcmask 64512   ;;  %vm705_vm1 = vcmask 97280  }
   0xf   : > { %v176_v4 = vadd.s32 8, %v175_v1  ;;  %vm177_vm2 = vcmp.eq.s32.totalorder %v175_v1, 0  ;;  %s3501_s19 = scalar_lea.vmem %s5679_s0, %s3078_s16  ;;  %vm3819_vm14 = vmand %vm448_vm12, %vm380_vm8  ;;  %s5558_s7 = scalar_lea.vmem %s5682_s3, %s3078_s16 }
  0x10   : > { %vm451_vm4 = vmpackc.low %vm177_vm2, %vm177_vm2  ;;  %v181_v6 = vld [vmem:[%s3501_s19] sm:$0xff]  ;;  %v182_v7 = vld [vmem:[%s3501_s19 + $0x8] sm:$0xff] }
  0x11   : > { %v183_v8 = vld [vmem:[%s3501_s19 + $0x10] sm:$0xff]  ;;  %vm180_vm5 = vcmp.eq.s32.totalorder %v176_v4, 15  ;;  %v3508_v10 = vsel %vm451_vm4, 65537, %v3455_v9  ;;  %v213_v12 = vpack.c.bf16 %v182_v7, %v181_v6  ;;  %v184_v13 = vld [vmem:[%s3501_s19 + $0x18] sm:$0xff]  ;;  %v185_v14 = vld [vmem:[%s3501_s19 + $0x20] sm:$0xff] }
  0x12   : > { %v186_v15 = vld [vmem:[%s3501_s19 + $0x28] sm:$0xff]  ;;  %v2964_v16 = vcombine.low %v3508_v10, %v3512_v11  ;;  %v3519_v17 = vpack.c.bf16 %v184_v13, %v183_v8  ;;  %vm478_vm7 = vmpackc.low %vm180_vm5, %vm180_vm5  ;;  %v187_v19 = vld [vmem:[%s3501_s19 + $0x30] sm:$0xff] }
  0x13   : > { %v215_v18 = vpack.c.bf16 %v186_v15, %v185_v14  ;;  %v188_v20 = vld [vmem:[%s3501_s19 + $0x38] sm:$0xff]  ;;  %521 = vrot.lane.b32.xlu0 %v213_v12, %s3456_s20  ;;  %v238_v21 = vshrl.u32 %v213_v12, 16  ;;  %v241_v22 = vshll.u32 %v213_v12, 16  ;;  %v480_v23 = vsel %vm478_vm7, 65537, %v3455_v9  ;;  %v189_v36 = vld [vmem:[%s3501_s19 + $0x40] sm:$0xff]  ;;  %v190_v37 = vld [vmem:[%s3501_s19 + $0x48] sm:$0xff] }
  0x14   : > { %v231_v26 = vshrl.u32 %v3519_v17, 16  ;;  %v234_v27 = vshll.u32 %v3519_v17, 16  ;;  %v2965_v30 = vcombine.low %v3512_v11, %v480_v23  ;;  %v3529_v31 = vpack.c.bf16 %v188_v20, %v187_v19  ;;  %v191_v46 = vld [vmem:[%s3501_s19 + $0x50] sm:$0xff]  ;;  %v192_v47 = vld [vmem:[%s3501_s19 + $0x58] sm:$0xff]  ;;  %v193_v52 = vld [vmem:[%s3501_s19 + $0x60] sm:$0xff] }
  0x15   : > { %v247_v24 = vshrl.u32 %v215_v18, 16  ;;  %v250_v25 = vshll.u32 %v215_v18, 16  ;;  %v240_v28 = vrot.slane %v238_v21, 7  ;;  %v3526_v29 = vrot.slane %v241_v22, 1  ;;  %v194_v53 = vld [vmem:[%s3501_s19 + $0x68] sm:$0xff]  ;;  %v195_v54 = vld [vmem:[%s3501_s19 + $0x70] sm:$0xff] }
  0x16   : > { %v233_v32 = vrot.slane %v231_v26, 7  ;;  %v381_v33 = vrot.slane %v234_v27, 1  ;;  %vm3538_vm9 = vcmp.ne.s16.totalorder %v2965_v30, 0  ;;  %v258_v41 = vshll.u32 %v3529_v31, 16  ;;  %v196_v59 = vld [vmem:[%s3501_s19 + $0x78] sm:$0xff]  ;;  %v197_v60 = vld [vmem:[%s3501_s19 + $0x80] sm:$0xff] }
  0x17   : > { %v3531_v34 = vrot.slane %v247_v24, 7  ;;  %v387_v35 = vrot.slane %v250_v25, 1  ;;  %519 = vrot.lane.b32.xlu0 %v3519_v17, %s3456_s20  ;;  %v243_v38 = vor.u32 %v241_v22, %v240_v28  ;;  %v385_v39 = vor.u32 %v3526_v29, %v238_v21  ;;  %v198_v61 = vld [vmem:[%s3501_s19 + $0x88] sm:$0xff]  ;;  %v3598_v6 = vld [vmem:[%s5680_s1 + $0x10] sm:$0x3f]  }
  0x18   : > { %v3544_v44 = vor.u32 %v234_v27, %v233_v32  ;;  %v3546_v45 = vor.u32 %v381_v33, %v231_v26  ;;  %v390_v50 = vrot.slane %v258_v41, 1  ;;  %v217_v51 = vpack.c.bf16 %v190_v37, %v189_v36  ;;  %3388 = vmatprep.subr.msk.bf16.mxu0 %vm738_vm3, %v3598_v6 }
  0x19   : > { %v252_v42 = vor.u32 %v250_v25, %v3531_v34  ;;  %v389_v43 = vor.u32 %v387_v35, %v247_v24  ;;  %v3551_v48 = vsel %vm229_vm6, %v233_v32, %v243_v38  ;;  %v3554_v49 = vsel %vm380_vm8, %v385_v39, %v381_v33  ;;  %v199_v38 = vld [vmem:[%s3501_s19 + $0x90] sm:$0xff]  ;;  %v200_v39 = vld [vmem:[%s3501_s19 + $0x98] sm:$0xff] }
  0x1a   : > { %v486_v55 = vsel %vm3538_vm9, %v3551_v48, %v3554_v49  ;;  %v3568_v57 = vsel %vm229_vm6, %v240_v28, %v3544_v44  ;;  %v3572_v58 = vsel %vm380_vm8, %v3546_v45, %v387_v35  ;;  %v263_v0 = vshrl.u32 %v217_v51, 16 }
  0x1b   : > { %v3564_v56 = vsel %vm229_vm6, %v233_v32, %v252_v42  ;;  %523 = vrot.lane.b32.xlu0 %v215_v18, %s3456_s20  ;;  %571 = vrot.lane.b32.xlu1 %v486_v55, %s3457_s21  ;;  %v3580_v62 = vsel %vm380_vm8, %v389_v43, %v390_v50  ;;  %v487_v63 = vsel %vm3538_vm9, %v3568_v57, %v3572_v58  ;;  %v266_v1 = vshll.u32 %v217_v51, 16  ;;  %v201_v43 = vld [vmem:[%s3501_s19 + $0xa0] sm:$0xff] }
  0x1c   : > { %v488_v2 = vsel %vm3538_vm9, %v3564_v56, %v3580_v62  ;;  %v3590_v3 = vpack.c.bf16 %v192_v47, %v191_v46  ;;  %v255_v4 = vshrl.u32 %v3529_v31, 16  ;;  %v3593_v5 = vpack.c.bf16 %v194_v53, %v193_v52  ;;  %v202_v46 = vld [vmem:[%s3501_s19 + $0xa8] sm:$0xff] }
  0x1d   : > { %v265_v7 = vrot.slane %v263_v0, 7  ;;  %v393_v8 = vrot.slane %v266_v1, 1  ;;  %v3600_v9 = vpack.c.bf16 %v196_v59, %v195_v54  ;;  %v3602_v12 = vpack.c.bf16 %v198_v61, %v197_v60 }
  0x1e   : > { %v257_v13 = vrot.slane %v255_v4, 7  ;;  %v274_v14 = vshll.u32 %v3590_v3, 16  ;;  %v392_v15 = vor.u32 %v390_v50, %v255_v4  ;;  %v279_v18 = vshrl.u32 %v3593_v5, 16 }
  0x1f   : > { %575 = vrot.lane.b32.xlu0 %v488_v2, %s3457_s21  ;;  %573 = vrot.lane.b32.xlu1 %v487_v63, %s3457_s21  ;;  %v268_v19 = vor.u32 %v266_v1, %v265_v7  ;;  %v395_v20 = vor.u32 %v393_v8, %v263_v0  ;;  %v282_v21 = vshll.u32 %v3593_v5, 16  ;;  %v271_v22 = vshrl.u32 %v3590_v3, 16  ;;  %v203_v63 = vld [vmem:[%s3501_s19 + $0xb0] sm:$0xff]  ;;  %v204_v0 = vld [vmem:[%s3501_s19 + $0xb8] sm:$0xff] }
  0x20   : > { %v396_v23 = vrot.slane %v274_v14, 1  ;;  %v260_v24 = vor.u32 %v258_v41, %v257_v13  ;;  %v3613_v25 = vsel %vm380_vm8, %v392_v15, %v393_v8  ;;  %v281_v26 = vrot.slane %v279_v18, 7 }
  0x21   : > { %v3616_v27 = vsel %vm229_vm6, %v257_v13, %v268_v19  ;;  %v273_v28 = vrot.slane %v271_v22, 7  ;;  %v290_v30 = vshll.u32 %v3600_v9, 16  ;;  %v399_v32 = vrot.slane %v282_v21, 1 }
  0x22   : > { %v3620_v33 = vsel %vm380_vm8, %v395_v20, %v396_v23  ;;  %v3624_v35 = vsel %vm229_vm6, %v3531_v34, %v260_v24  ;;  %v284_v36 = vor.u32 %v282_v21, %v281_v26  ;;  %v398_v37 = vor.u32 %v396_v23, %v271_v22  ;;  %v205_v24 = vld [vmem:[%s3501_s19 + $0xc0] sm:$0xff] }
  0x23   : > { %527 = vrot.lane.b32.xlu0 %v217_v51, %s3456_s20  ;;  %525 = vrot.lane.b32.xlu1 %v3529_v31, %s3456_s20  ;;  %v401_v41 = vor.u32 %v399_v32, %v279_v18  ;;  %v402_v42 = vrot.slane %v290_v30, 1  ;;  %v490_v34 = vsel %vm3538_vm9, %v3616_v27, %v3620_v33  ;;  %v489_v47 = vsel %vm3538_vm9, %v3624_v35, %v3613_v25 }
  0x24   : > { %v276_v50 = vor.u32 %v274_v14, %v273_v28  ;;  %v295_v51 = vshrl.u32 %v3602_v12, 16  ;;  %v3643_v31 = vsel %vm229_vm6, %v273_v28, %v284_v36  ;;  %v298_v52 = vshll.u32 %v3602_v12, 16  ;;  %v206_v28 = vld [vmem:[%s3501_s19 + $0xc8] sm:$0xff] }
  0x25   : > { %v3646_v53 = vpack.c.bf16 %v200_v39, %v199_v38  ;;  %v287_v54 = vshrl.u32 %v3600_v9, 16  ;;  %v3650_v55 = vsel %vm380_vm8, %v401_v41, %v402_v42  ;;  %v3653_v59 = vsel %vm380_vm8, %v398_v37, %v399_v32  ;;  %v208_v37 = vld [vmem:[%s3501_s19 + $0xd8] sm:$0xff] }
  0x26   : > { %v3655_v60 = vrot.slane %v295_v51, 7  ;;  %v3657_v61 = vpack.c.bf16 %v202_v46, %v201_v43  ;;  %v3664_v1 = vsel %vm229_vm6, %v265_v7, %v276_v50  ;;  %v405_v8 = vrot.slane %v298_v52, 1 }
  0x27   : > { %579 = vrot.lane.b32.xlu0 %v490_v34, %s3457_s21  ;;  %577 = vrot.lane.b32.xlu1 %v489_v47, %s3457_s21  ;;  %v289_v2 = vrot.slane %v287_v54, 7  ;;  %v306_v4 = vshll.u32 %v3646_v53, 16  ;;  %v404_v14 = vor.u32 %v402_v42, %v287_v54  ;;  %v3670_v22 = vpack.c.bf16 %v204_v0, %v203_v63  ;;  %v210_v54 = vld [vmem:[%s3501_s19 + $0xe8] sm:$0xff] }
  0x28   : > { %v300_v13 = vor.u32 %v298_v52, %v3655_v60  ;;  %v311_v15 = vshrl.u32 %v3657_v61, 16  ;;  %v314_v18 = vshll.u32 %v3657_v61, 16  ;;  %v407_v19 = vor.u32 %v405_v8, %v295_v51  ;;  %v209_v52 = vld [vmem:[%s3501_s19 + $0xe0] sm:$0xff] }
  0x29   : > { %v408_v20 = vrot.slane %v306_v4, 1  ;;  %v292_v21 = vor.u32 %v290_v30, %v289_v2  ;;  %v303_v7 = vshrl.u32 %v3646_v53, 16  ;;  %v322_v32 = vshll.u32 %v3670_v22, 16  ;;  %v207_v30 = vld [vmem:[%s3501_s19 + $0xd0] sm:$0xff] }
  0x2a   : > { %v3673_v23 = vrot.slane %v311_v15, 7  ;;  %v411_v36 = vrot.slane %v314_v18, 1  ;;  %v492_v38 = vsel %vm3538_vm9, %v3643_v31, %v3650_v55  ;;  %v3693_v39 = vsel %vm229_vm6, %v289_v2, %v300_v13  ;;  %v212_v13 = vld [vmem:[%s3501_s19 + $0xf8] sm:$0xff] }
  0x2b   : > { %531 = vrot.lane.b32.xlu0 %v3593_v5, %s3456_s20  ;;  %529 = vrot.lane.b32.xlu1 %v3590_v3, %s3456_s20  ;;  %v491_v5 = vsel %vm3538_vm9, %v3664_v1, %v3653_v59  ;;  %v305_v3 = vrot.slane %v303_v7, 7  ;;  %v3696_v41 = vsel %vm380_vm8, %v407_v19, %v408_v20  ;;  %v3699_v42 = vsel %vm229_vm6, %v281_v26, %v292_v21 }
  0x2c   : > { %v3702_v43 = vsel %vm380_vm8, %v404_v14, %v405_v8  ;;  %v3704_v46 = vpack.c.bf16 %v206_v28, %v205_v24  ;;  %v316_v34 = vor.u32 %v314_v18, %v3673_v23  ;;  %v413_v47 = vor.u32 %v411_v36, %v311_v15  ;;  %v211_v8 = vld [vmem:[%s3501_s19 + $0xf0] sm:$0xff] }
  0x2d   : > { %v3707_v50 = vpack.c.bf16 %v208_v37, %v207_v30  ;;  %v319_v51 = vshrl.u32 %v3670_v22, 16  ;;  %v414_v26 = vrot.slane %v322_v32, 1  ;;  %v410_v63 = vor.u32 %v408_v20, %v303_v7 }
  0x2e   : > { %v327_v0 = vshrl.u32 %v3704_v46, 16  ;;  %v330_v2 = vshll.u32 %v3704_v46, 16  ;;  %vm3721_vm10 = vcmp.ne.s16.totalorder %v2964_v16, 0  ;;  %v308_v15 = vor.u32 %v306_v4, %v305_v3 }
  0x2f   : > { %583 = vrot.lane.b32.xlu0 %v492_v38, %s3457_s21  ;;  %581 = vrot.lane.b32.xlu1 %v491_v5, %s3457_s21  ;;  %v494_v18 = vsel %vm3538_vm9, %v3693_v39, %v3696_v41  ;;  %v493_v19 = vsel %vm3538_vm9, %v3699_v42, %v3702_v43  ;;  %v321_v20 = vrot.slane %v319_v51, 7  ;;  %v338_v10 = vshll.u32 %v3707_v50, 16 }
  0x30   : > { %v329_v11 = vrot.slane %v327_v0, 7  ;;  %v417_v16 = vrot.slane %v330_v2, 1  ;;  %v3734_v21 = vpack.c.bf16 %v210_v54, %v209_v52  ;;  %v3736_v4 = vpack.c.bf16 %v212_v13, %v211_v8 }
  0x31   : > { %v3743_v7 = vsel %vm229_vm6, %v305_v3, %v316_v34  ;;  %v3746_v24 = vsel %vm380_vm8, %v413_v47, %v414_v26  ;;  %v3749_v28 = vsel %vm380_vm8, %v410_v63, %v411_v36  ;;  %v335_v30 = vshrl.u32 %v3707_v50, 16 }
  0x32   : > { %v3754_v37 = vsel %vm229_vm6, %v3655_v60, %v308_v15  ;;  %v346_v38 = vshll.u32 %v3734_v21, 16  ;;  %v420_v5 = vrot.slane %v338_v10, 1  ;;  %v324_v3 = vor.u32 %v322_v32, %v321_v20 }
  0x33   : > { %535 = vrot.lane.b32.xlu0 %v3602_v12, %s3456_s20  ;;  %533 = vrot.lane.b32.xlu1 %v3600_v9, %s3456_s20  ;;  %v343_v12 = vshrl.u32 %v3734_v21, 16  ;;  %v354_v9 = vshll.u32 %v3736_v4, 16  ;;  %v416_v34 = vor.u32 %v414_v26, %v319_v51  ;;  %v337_v47 = vrot.slane %v335_v30, 7 }
  0x34   : > { %v332_v52 = vor.u32 %v330_v2, %v329_v11  ;;  %v419_v54 = vor.u32 %v417_v16, %v327_v0  ;;  %v423_v63 = vrot.slane %v346_v38, 1  ;;  %v496_v60 = vsel %vm3538_vm9, %v3743_v7, %v3746_v24 }
  0x35   : > { %v345_v36 = vrot.slane %v343_v12, 7  ;;  %v340_v8 = vor.u32 %v338_v10, %v337_v47  ;;  %v422_v13 = vor.u32 %v420_v5, %v335_v30  ;;  %v351_v51 = vshrl.u32 %v3736_v4, 16 }
  0x36   : > { %v425_v0 = vor.u32 %v423_v63, %v343_v12  ;;  %v426_v2 = vrot.slane %v354_v9, 1  ;;  %v3785_v10 = vsel %vm380_vm8, %v416_v34, %v417_v16  ;;  %v3788_v12 = vsel %vm229_vm6, %v321_v20, %v332_v52 }
  0x37   : > { %587 = vrot.lane.b32.xlu0 %v494_v18, %s3457_s21  ;;  %585 = vrot.lane.b32.xlu1 %v493_v19, %s3457_s21  ;;  %v348_v26 = vor.u32 %v346_v38, %v345_v36  ;;  %v495_v18 = vsel %vm3538_vm9, %v3754_v37, %v3749_v28  ;;  %v3782_v19 = vsel %vm229_vm6, %v3673_v23, %v324_v3  ;;  %v353_v30 = vrot.slane %v351_v51, 7 }
  0x38   : > { %v3791_v38 = vsel %vm380_vm8, %v419_v54, %v420_v5  ;;  %v3797_v15 = vsel %vm3767_vm13, %v3519_v17, %v3544_v44  ;;  %v3802_v23 = vsel %vm380_vm8, %v3546_v45, %v3526_v29  ;;  %v3812_v16 = vsel %vm229_vm6, %v329_v11, %v340_v8 }
  0x39   : > { %v3809_v20 = vsel %vm229_vm6, %v337_v47, %v348_v26  ;;  %v3815_v17 = vsel %vm380_vm8, %v422_v13, %v423_v63  ;;  %v3824_v44 = vsel %vm380_vm8, %v425_v0, %v426_v2  ;;  %v428_v45 = vor.u32 %v426_v2, %v351_v51 }
  0x3a   : > { %v356_v11 = vor.u32 %v354_v9, %v353_v30  ;;  %v3835_v5 = vsel %vm229_vm6, %v353_v30, %v348_v26  ;;  %v462_v3 = vsel %vm3721_vm10, %v3580_v62, %v3564_v56  ;;  %v464_v34 = vsel %vm3721_vm10, %v3620_v33, %v3616_v27 }
  0x3b   : > { %539 = vrot.lane.b32.xlu0 %v3657_v61, %s3456_s20  ;;  %537 = vrot.lane.b32.xlu1 %v3646_v53, %s3456_s20  ;;  %v461_v61 = vsel %vm3721_vm10, %v3572_v58, %v3568_v57  ;;  %v3848_v47 = vsel %vm3819_vm14, %v425_v0, %v3734_v21  ;;  %v463_v57 = vsel %vm3721_vm10, %v3613_v25, %v3624_v35  ;;  %v3406_v0 = vld [vmem:[%s5680_s1] sm:$0x3f]  }
  0x3c   : > { %v466_v56 = vsel %vm3721_vm10, %v3650_v55, %v3643_v31  ;;  %v465_v58 = vsel %vm3721_vm10, %v3653_v59, %v3664_v1  ;;  %v468_v62 = vsel %vm3721_vm10, %v3696_v41, %v3693_v39  ;;  %v467_v9 = vsel %vm3721_vm10, %v3702_v43, %v3699_v42  ;;  %3387 = vmatprep.subr.msk.bf16.mxu1 %vm738_vm3, %v3406_v0 }
  0x3d   : > { %v470_v52 = vsel %vm3721_vm10, %v3746_v24, %v3743_v7  ;;  %v469_v54 = vsel %vm3721_vm10, %v3749_v28, %v3754_v37  ;;  %v471_v8 = vsel %vm3721_vm10, %v3785_v10, %v3782_v19  ;;  %v474_v13 = vsel %vm3721_vm10, %v3824_v44, %v3809_v20 }
  0x3e   : > { %v476_v51 = vsel %vm3721_vm10, %v3848_v47, %v3835_v5  ;;  %v473_v26 = vsel %vm3721_vm10, %v3815_v17, %v3812_v16  ;;  %v497_v2 = vsel %vm3538_vm9, %v3782_v19, %v3785_v10  ;;  %v3916_v30 = vsel %vm229_vm6, %v345_v36, %v356_v11 }
  0x3f   : > { %591 = vrot.lane.b32.xlu0 %v496_v60, %s3457_s21  ;;  %589 = vrot.lane.b32.xlu1 %v495_v18, %s3457_s21  ;;  %v472_v60 = vsel %vm3721_vm10, %v3791_v38, %v3788_v12  ;;  %v498_v18 = vsel %vm3538_vm9, %v3788_v12, %v3791_v38  ;;  %v3919_v53 = vsel %vm380_vm8, %v428_v45, %v423_v63 }
  0x40   : > { %v500_v36 = vsel %vm3538_vm9, %v3809_v20, %v3824_v44  ;;  %v499_v63 = vsel %vm3538_vm9, %v3812_v16, %v3815_v17  ;;  %v502_v45 = vsel %vm3538_vm9, %v3835_v5, %v3848_v47  ;;  %v5695_v20 = vsel %vm3721_vm10, %v3802_v23, %v3797_v15 }
  0x43   : > { %543 = vrot.lane.b32.xlu0 %v3704_v46, %s3456_s20  ;;  %541 = vrot.lane.b32.xlu1 %v3670_v22, %s3456_s20  ;;  %v911_v22 = vsel %vm738_vm3, %v3406_v0, 0  ;;  %v475_v46 = vsel %vm3721_vm10, %v3919_v53, %v3916_v30 }
  0x44   : > { %3217 = vmatpush3.bf16.msra.mxu1 %v911_v22 }
  0x47   : > { %595 = vrot.lane.b32.xlu0 %v498_v18, %s3457_s21  ;;  %593 = vrot.lane.b32.xlu1 %v497_v2, %s3457_s21 }
  0x4b   : > { %547 = vrot.lane.b32.xlu0 %v3734_v21, %s3456_s20  ;;  %545 = vrot.lane.b32.xlu1 %v3707_v50, %s3456_s20  ;;  %v485_v21 = vsel %vm3538_vm9, %v3797_v15, %v3802_v23  ;;  %v501_v50 = vsel %vm3538_vm9, %v3916_v30, %v3919_v53 }
  0x4f   : > { %599 = vrot.lane.b32.xlu0 %v500_v36, %s3457_s21  ;;  %597 = vrot.lane.b32.xlu1 %v499_v63, %s3457_s21 }
  0x53   : > { %569 = vrot.lane.b32.xlu0 %v485_v21, %s3457_s21  ;;  %549 = vrot.lane.b32.xlu1 %v3736_v4, %s3456_s20  ;;  %v5694_v4 = vsel %vm3721_vm10, %v3554_v49, %v3551_v48  ;;  %v1085_v48 = vsel %vm738_vm3, %v3598_v6, 0 }
  0x57   : > { %601 = vrot.lane.b32.xlu1 %v501_v50, %s3457_s21 }
  0x5b   : > { %603 = vrot.lane.b32.xlu1 %v502_v45, %s3457_s21 }
  0x85   : > { %v522_v11 = vpop.permute.xlu0 %521 }
  0x86   : > { %v611_v2 = vsel %vm605_vm15, %v5694_v4, %v522_v11 }
  0x89   : > { %v3960_v0 = vpop.permute.xlu0 %519 }
  0x8a   : > { %v613_v63 = vsel %vm605_vm15, %v461_v61, %v3960_v0  ;;  %v608_v16 = vsel %vm605_vm15, %v5695_v20, %v3960_v0 }
  0x8d   : > { %v524_v18 = vpop.permute.xlu0 %523  ;;  %v572_v22 = vpop.permute.xlu1 %571 }
  0x8e   : > { %v3969_v36 = vsel %vm658_vm0, %v611_v2, %v572_v22  ;;  %v616_v21 = vsel %vm605_vm15, %v462_v3, %v524_v18 }
  0x8f   : > { %3184 = vmatprep.mubr.msk.bf16.mxu0 %vm705_vm1, %v3969_v36 }
  0x91   : > { %v576_v50 = vpop.permute.xlu0 %575  ;;  %v574_v45 = vpop.permute.xlu1 %573 }
  0x92   : > { %v3979_v49 = vsel %vm658_vm0, %v616_v21, %v576_v50  ;;  %v3982_v11 = vsel %vm658_vm0, %v613_v63, %v574_v45 }
  0x93   : > { %3185 = vmatmul.mubr.msk.bf16.vlgmr.msra.gmra.mxu0 %vm705_vm1, %v3982_v11 }
  0x94   : > { %3251 = vmatpush3.bf16.msra.mxu0 %v1085_v48  ;;  %3188 = vmatprep.mubr.msk.bf16.mxu0 %vm705_vm1, %v3979_v49 }
  0x95   : > { %v528_v61 = vpop.permute.xlu0 %527  ;;  %v526_v3 = vpop.permute.xlu1 %525 }
  0x96   : > { %v622_v6 = vsel %vm605_vm15, %v464_v34, %v528_v61  ;;  %v619_v4 = vsel %vm605_vm15, %v463_v57, %v526_v3 }
  0x99   : > { %v580_v2 = vpop.permute.xlu0 %579  ;;  %v578_v18 = vpop.permute.xlu1 %577 }
  0x9a   : > { %v4001_v22 = vsel %vm658_vm0, %v622_v6, %v580_v2  ;;  %v4004_v63 = vsel %vm658_vm0, %v619_v4, %v578_v18 }
  0x9b   : > { %3189 = vmatmul.mubr.msk.bf16.gmra.mxu0 %vm705_vm1, %v4004_v63 }
  0x9c   : > { %3192 = vmatprep.mubr.msk.bf16.mxu0 %vm705_vm1, %v4001_v22 }
  0x9d   : > { %v532_v27 = vpop.permute.xlu0 %531  ;;  %v530_v33 = vpop.permute.xlu1 %529 }
  0x9e   : > { %v628_v25 = vsel %vm605_vm15, %v466_v56, %v532_v27  ;;  %v625_v35 = vsel %vm605_vm15, %v465_v58, %v530_v33 }
  0xa1   : > { %v584_v34 = vpop.permute.xlu0 %583  ;;  %v582_v57 = vpop.permute.xlu1 %581 }
  0xa2   : > { %v4023_v21 = vsel %vm658_vm0, %v628_v25, %v584_v34  ;;  %v4026_v50 = vsel %vm658_vm0, %v625_v35, %v582_v57 }
  0xa3   : > { %3193 = vmatmul.mubr.msk.bf16.gmra.mxu0 %vm705_vm1, %v4026_v50 }
  0xa4   : > { %3196 = vmatprep.mubr.msk.bf16.mxu0 %vm705_vm1, %v4023_v21 }
  0xa5   : > { %v536_v31 = vpop.permute.xlu0 %535  ;;  %v534_v55 = vpop.permute.xlu1 %533 }
  0xa6   : > { %v634_v59 = vsel %vm605_vm15, %v468_v62, %v536_v31  ;;  %v631_v1 = vsel %vm605_vm15, %v467_v9, %v534_v55 }
  0xa9   : > { %v588_v56 = vpop.permute.xlu0 %587  ;;  %v586_v58 = vpop.permute.xlu1 %585 }
  0xaa   : > { %v678_v45 = vsel %vm658_vm0, %v634_v59, %v588_v56  ;;  %v676_v48 = vsel %vm658_vm0, %v631_v1, %v586_v58 }
  0xab   : > { %3197 = vmatmul.mubr.msk.bf16.gmra.mxu0 %vm705_vm1, %v676_v48 }
  0xac   : > { %3200 = vmatprep.mubr.msk.bf16.mxu0 %vm705_vm1, %v678_v45 }
  0xad   : > { %v540_v39 = vpop.permute.xlu0 %539  ;;  %v538_v41 = vpop.permute.xlu1 %537 }
  0xae   : > { %v640_v42 = vsel %vm605_vm15, %v470_v52, %v540_v39  ;;  %v637_v43 = vsel %vm605_vm15, %v469_v54, %v538_v41 }
  0xb1   : > { %v592_v62 = vpop.permute.xlu0 %591  ;;  %v590_v9 = vpop.permute.xlu1 %589 }
  0xb2   : > { %v682_v61 = vsel %vm658_vm0, %v640_v42, %v592_v62  ;;  %v680_v3 = vsel %vm658_vm0, %v637_v43, %v590_v9 }
  0xb3   : > { %3201 = vmatmul.mubr.msk.bf16.gmra.mxu0 %vm705_vm1, %v680_v3 }
  0xb4   : > { %3204 = vmatprep.mubr.msk.bf16.mxu0 %vm705_vm1, %v682_v61 }
  0xb5   : > { %v544_v7 = vpop.permute.xlu0 %543  ;;  %v542_v24 = vpop.permute.xlu1 %541 }
  0xb6   : > { %v646_v28 = vsel %vm605_vm15, %v472_v60, %v544_v7  ;;  %v643_v37 = vsel %vm605_vm15, %v471_v8, %v542_v24 }
  0xb9   : > { %v596_v52 = vpop.permute.xlu0 %595  ;;  %v594_v54 = vpop.permute.xlu1 %593 }
  0xba   : > { %v686_v6 = vsel %vm658_vm0, %v646_v28, %v596_v52  ;;  %v684_v4 = vsel %vm658_vm0, %v643_v37, %v594_v54 }
  0xbb   : > { %3205 = vmatmul.mubr.msk.bf16.gmra.mxu0 %vm705_vm1, %v684_v4 }
  0xbc   : > { %3208 = vmatprep.mubr.msk.bf16.mxu0 %vm705_vm1, %v686_v6 }
  0xbd   : > { %v548_v12 = vpop.permute.xlu0 %547  ;;  %v546_v38 = vpop.permute.xlu1 %545 }
  0xbe   : > { %v657_v19 = vsel %vm605_vm15, %v476_v51, %v548_v12  ;;  %v652_v10 = vsel %vm605_vm15, %v474_v13, %v548_v12  ;;  %v649_v60 = vsel %vm605_vm15, %v473_v26, %v546_v38 }
  0xc1   : > { %v600_v8 = vpop.permute.xlu0 %599  ;;  %v598_v2 = vpop.permute.xlu1 %597 }
  0xc2   : > { %v690_v5 = vsel %vm658_vm0, %v652_v10, %v600_v8  ;;  %v688_v47 = vsel %vm658_vm0, %v649_v60, %v598_v2 }
  0xc3   : > { %3209 = vmatmul.mubr.msk.bf16.gmra.mxu0 %vm705_vm1, %v688_v47 }
  0xc4   : > { %3212 = vmatprep.mubr.msk.bf16.mxu0 %vm705_vm1, %v690_v5 }
  0xc5   : > { %v570_v17 = vpop.permute.xlu0 %569  ;;  %v550_v44 = vpop.permute.xlu1 %549 }
  0xc6   : > { %v660_v13 = vsel %vm658_vm0, %v608_v16, %v570_v17  ;;  %v655_v51 = vsel %vm605_vm15, %v475_v46, %v550_v44 }
  0xc7   : > { %3218 = vmatprep.mubr.msk.bf16.mxu1 %vm705_vm1, %v660_v13 }
  0xc8   : > { %3219 = vmatmul.mubr.msk.bf16.vlgmr.msra.gmra.mxu1 %vm705_vm1, %v3969_v36 }
  0xc9   : > { %v602_v26 = vpop.permute.xlu1 %601  ;;  %3222 = vmatprep.mubr.msk.bf16.mxu1 %vm705_vm1, %v3982_v11 }
  0xca   : > { %v692_v15 = vsel %vm658_vm0, %v655_v51, %v602_v26 }
  0xcb   : > { %3213 = vmatmul.mubr.msk.bf16.gmra.mxu0 %vm705_vm1, %v692_v15 }
  0xcc   : > { %3252 = vmatprep.mubr.msk.bf16.mxu0 %vm705_vm1, %v3982_v11 }
  0xcd   : > { %v604_v23 = vpop.permute.xlu1 %603 }
  0xce   : > { %v694_v53 = vsel %vm658_vm0, %v657_v19, %v604_v23 }
  0xd0   : > { %3223 = vmatmul.mubr.msk.bf16.gmra.mxu1 %vm705_vm1, %v3979_v49 }
  0xd1   : > { %3226 = vmatprep.mubr.msk.bf16.mxu1 %vm705_vm1, %v4004_v63 }
  0xd3   : > { %3253 = vmatmul.mubr.msk.bf16.vlgmr.msra.gmra.mxu0 %vm705_vm1, %v3979_v49 }
  0xd4   : > { %3256 = vmatprep.mubr.msk.bf16.mxu0 %vm705_vm1, %v4004_v63 }
  0xd8   : > { %3227 = vmatmul.mubr.msk.bf16.gmra.mxu1 %vm705_vm1, %v4001_v22 }
  0xd9   : > { %3230 = vmatprep.mubr.msk.bf16.mxu1 %vm705_vm1, %v4026_v50 }
  0xdb   : > { %3257 = vmatmul.mubr.msk.bf16.gmra.mxu0 %vm705_vm1, %v4001_v22 }
  0xdc   : > { %3260 = vmatprep.mubr.msk.bf16.mxu0 %vm705_vm1, %v4026_v50 }
  0xe0   : > { %3231 = vmatmul.mubr.msk.bf16.gmra.mxu1 %vm705_vm1, %v4023_v21 }
  0xe1   : > { %3234 = vmatprep.mubr.msk.bf16.mxu1 %vm705_vm1, %v676_v48 }
  0xe3   : > { %3261 = vmatmul.mubr.msk.bf16.gmra.mxu0 %vm705_vm1, %v4023_v21 }
  0xe4   : > { %3264 = vmatprep.mubr.msk.bf16.mxu0 %vm705_vm1, %v676_v48 }
  0xe8   : > { %3235 = vmatmul.mubr.msk.bf16.gmra.mxu1 %vm705_vm1, %v678_v45 }
  0xe9   : > { %3238 = vmatprep.mubr.msk.bf16.mxu1 %vm705_vm1, %v680_v3 }
  0xeb   : > { %3265 = vmatmul.mubr.msk.bf16.gmra.mxu0 %vm705_vm1, %v678_v45 }
  0xec   : > { %3268 = vmatprep.mubr.msk.bf16.mxu0 %vm705_vm1, %v680_v3 }
  0xf0   : > { %3239 = vmatmul.mubr.msk.bf16.gmra.mxu1 %vm705_vm1, %v682_v61 }
  0xf1   : > { %3242 = vmatprep.mubr.msk.bf16.mxu1 %vm705_vm1, %v684_v4 }
  0xf3   : > { %3269 = vmatmul.mubr.msk.bf16.gmra.mxu0 %vm705_vm1, %v682_v61 }
  0xf4   : > { %3272 = vmatprep.mubr.msk.bf16.mxu0 %vm705_vm1, %v684_v4 }
  0xf8   : > { %3243 = vmatmul.mubr.msk.bf16.gmra.mxu1 %vm705_vm1, %v686_v6 }
  0xf9   : > { %3246 = vmatprep.mubr.msk.bf16.mxu1 %vm705_vm1, %v688_v47 }
  0xfb   : > { %3273 = vmatmul.mubr.msk.bf16.gmra.mxu0 %vm705_vm1, %v686_v6 }
  0xfc   : > { %3276 = vmatprep.mubr.msk.bf16.mxu0 %vm705_vm1, %v688_v47 }
 0x100   : > { %3247 = vmatmul.mubr.msk.bf16.gmra.mxu1 %vm705_vm1, %v690_v5 }
 0x103   : > { %3277 = vmatmul.mubr.msk.bf16.gmra.mxu0 %vm705_vm1, %v690_v5 }
 0x104   : > { %3280 = vmatprep.mubr.msk.bf16.mxu0 %vm705_vm1, %v692_v15 }
 0x10b   : > { %3281 = vmatmul.mubr.msk.bf16.gmra.mxu0 %vm705_vm1, %v694_v53 }
 0x153   : > { %v3186_v30 = vpop.f32.mrf.mxu0 }
 0x155   : > { %v776_v46 = vpop.f32.mrf.mxu0 }
 0x157   : > { %v3187_v0 = vpop.f32.mrf.mxu0 }
 0x159   : > { %v779_v36 = vpop.f32.mrf.mxu0 }
 0x15b   : > { %v3190_v49 = vpop.f32.mrf.mxu0 }
 0x15d   : > { %v792_v11 = vpop.f32.mrf.mxu0 }
 0x15f   : > { %v4164_v18 = vpop.f32.mrf.mxu0 }
 0x161   : > { %v4166_v22 = vpop.f32.mrf.mxu0 }
 0x163   : > { %v4168_v63 = vpop.f32.mrf.mxu0 }
 0x165   : > { %v4170_v27 = vpop.f32.mrf.mxu0 }
 0x167   : > { %v4172_v33 = vpop.f32.mrf.mxu0 }
 0x169   : > { %v4174_v25 = vpop.f32.mrf.mxu0 }
 0x16b   : > { %v4176_v35 = vpop.f32.mrf.mxu0 }
 0x16d   : > { %v4178_v34 = vpop.f32.mrf.mxu0 }
 0x16f   : > { %v4180_v57 = vpop.f32.mrf.mxu0 }
 0x171   : > { %v4182_v21 = vpop.f32.mrf.mxu0 }
 0x173   : > { %v4184_v50 = vpop.f32.mrf.mxu0 }
 0x175   : > { %v4186_v31 = vpop.f32.mrf.mxu0 }
 0x177   : > { %v4188_v55 = vpop.f32.mrf.mxu0 }
 0x179   : > { %v4190_v59 = vpop.f32.mrf.mxu0 }
 0x17b   : > { %v4192_v1 = vpop.f32.mrf.mxu0 }
 0x17d   : > { %v4194_v56 = vpop.f32.mrf.mxu0 }
 0x17f   : > { %v4196_v58 = vpop.f32.mrf.mxu0 }
 0x181   : > { %v4198_v45 = vpop.f32.mrf.mxu0 }
 0x183   : > { %v4200_v48 = vpop.f32.mrf.mxu0 }
 0x185   : > { %v4202_v39 = vpop.f32.mrf.mxu0 }
 0x187   : > { %v4204_v41 = vpop.f32.mrf.mxu0 }
 0x188   : > { %v3220_v42 = vpop.f32.mrf.mxu1 }
 0x189   : > { %v4206_v43 = vpop.f32.mrf.mxu0  ;;  %v956_v38 = vadd.f32 %v3220_v42, %v3186_v30 }
 0x18a   : > { %v947_v62 = vpop.f32.mrf.mxu1 }
 0x18b   : > { %v4208_v9 = vpop.f32.mrf.mxu0  ;;  %v948_v6 = vadd.f32 %v947_v62, %v776_v46 }
 0x18c   : > { %v3221_v61 = vpop.f32.mrf.mxu1 }
 0x18d   : > { %v4210_v3 = vpop.f32.mrf.mxu0  ;;  %v959_v8 = vadd.f32 %v3221_v61, %v3187_v0 }
 0x18e   : > { %v950_v7 = vpop.f32.mrf.mxu1 }
 0x18f   : > { %v4212_v24 = vpop.f32.mrf.mxu0  ;;  %v951_v2 = vadd.f32 %v950_v7, %v779_v36 }
 0x190   : > { %v3224_v28 = vpop.f32.mrf.mxu1 }
 0x191   : > { %v4214_v37 = vpop.f32.mrf.mxu0  ;;  %v972_v0 = vadd.f32 %v3224_v28, %v3190_v49 }
 0x192   : > { %v963_v52 = vpop.f32.mrf.mxu1 }
 0x193   : > { %v3254_v54 = vpop.f32.mrf.mxu0  ;;  %v964_v51 = vadd.f32 %v963_v52, %v792_v11 }
 0x194   : > { %v3225_v4 = vpop.f32.mrf.mxu1  ;;  %v4218_v5 = vadd.f32 %v3254_v54, %v956_v38 }
 0x195   : > { %v1121_v12 = vpop.f32.mrf.mxu0 }
 0x196   : > { %v4216_v19 = vadd.f32 %v1121_v12, %v948_v6  ;;  %v966_v10 = vpop.f32.mrf.mxu1  ;;  %v1353_v15 = vmul.f32 %v4218_v5, %v4218_v5  ;;  %v1283_v36 = vsel %vm605_vm15, %v4218_v5, 0.0  ;;  %v975_v6 = vadd.f32 %v3225_v4, %v4164_v18 }
 0x197   : > { %v3255_v60 = vpop.f32.mrf.mxu0  ;;  %v967_v12 = vadd.f32 %v966_v10, %v4166_v22 }
 0x198   : > { %v3228_v47 = vpop.f32.mrf.mxu1  ;;  %v1351_v16 = vmul.f32 %v4216_v19, %v4216_v19  ;;  %v4222_v17 = vadd.f32 %v3255_v60, %v959_v8  ;;  %v1280_v23 = vsel %vm605_vm15, %v4216_v19, 0.0  ;;  %v1386_v60 = vsel %vm605_vm15, %v1353_v15, 0.0 }
 0x199   : > { %v1124_v20 = vpop.f32.mrf.mxu0 }
 0x19a   : > { %v4224_v44 = vadd.f32 %v1124_v20, %v951_v2  ;;  %v979_v13 = vpop.f32.mrf.mxu1  ;;  %v1383_v62 = vsel %vm605_vm15, %v1351_v16, 0.0  ;;  %v1354_v61 = vmul.f32 %v4222_v17, %v4222_v17  ;;  %v1285_v8 = vsel %vm605_vm15, %v4222_v17, 0.0 }
 0x19b   : > { %v3258_v26 = vpop.f32.mrf.mxu0 }
 0x19c   : > { %v1281_v53 = vsel %vm605_vm15, %v4224_v44, 0.0  ;;  %v1352_v30 = vmul.f32 %v4224_v44, %v4224_v44  ;;  %v3229_v46 = vpop.f32.mrf.mxu1  ;;  %v4247_v2 = vadd.f32 %v3258_v26, %v972_v0  ;;  %v1388_v18 = vsel %vm605_vm15, %v1354_v61, 0.0 }
 0x19d   : > { %v1282_v42 = vadd.f32 %v1281_v53, %v1280_v23  ;;  %v1137_v11 = vpop.f32.mrf.mxu0  ;;  %v980_v26 = vadd.f32 %v979_v13, %v4170_v27 }
 0x19e   : > { %v1384_v7 = vsel %vm605_vm15, %v1352_v30, 0.0  ;;  %v4240_v52 = vadd.f32 %v1137_v11, %v964_v51  ;;  %v982_v54 = vpop.f32.mrf.mxu1  ;;  %v1291_v13 = vsel %vm605_vm15, %v4247_v2, 0.0 }
 0x19f   : > { %v1284_v49 = vadd.f32 %v1283_v36, %v1282_v42  ;;  %v1385_v28 = vadd.f32 %v1384_v7, %v1383_v62  ;;  %v3259_v38 = vpop.f32.mrf.mxu0  ;;  %v1357_v42 = vmul.f32 %v4247_v2, %v4247_v2 }
 0x1a0   : > { %v1355_v20 = vmul.f32 %v4240_v52, %v4240_v52  ;;  %v3232_v16 = vpop.f32.mrf.mxu1  ;;  %v1287_v22 = vsel %vm605_vm15, %v4240_v52, 0.0  ;;  %v4254_v4 = vadd.f32 %v3259_v38, %v975_v6  ;;  %v988_v6 = vadd.f32 %v3228_v47, %v4168_v63 }
 0x1a1   : > { %v1387_v51 = vadd.f32 %v1386_v60, %v1385_v28  ;;  %v1286_v23 = vadd.f32 %v1285_v8, %v1284_v49  ;;  %v1140_v53 = vpop.f32.mrf.mxu0 }
 0x1a2   : > { %v4256_v10 = vadd.f32 %v1140_v53, %v967_v12  ;;  %v995_v15 = vpop.f32.mrf.mxu1  ;;  %v1390_v11 = vsel %vm605_vm15, %v1355_v20, 0.0  ;;  %v1358_v28 = vmul.f32 %v4254_v4, %v4254_v4  ;;  %v991_v20 = vadd.f32 %v3229_v46, %v4172_v33 }
 0x1a3   : > { %v1288_v30 = vadd.f32 %v1287_v22, %v1286_v23  ;;  %v1389_v0 = vadd.f32 %v1388_v18, %v1387_v51  ;;  %v3262_v36 = vpop.f32.mrf.mxu0  ;;  %v983_v51 = vadd.f32 %v982_v54, %v4174_v25  ;;  %v1394_v53 = vsel %vm605_vm15, %v1357_v42, 0.0 }
 0x1a4   : > { %v1289_v62 = vsel %vm605_vm15, %v4256_v10, 0.0  ;;  %v1356_v61 = vmul.f32 %v4256_v10, %v4256_v10  ;;  %v3233_v7 = vpop.f32.mrf.mxu1  ;;  %v1293_v18 = vsel %vm605_vm15, %v4254_v4, 0.0  ;;  %v4279_v22 = vadd.f32 %v3262_v36, %v988_v6 }
 0x1a5   : > { %v1391_v12 = vadd.f32 %v1390_v11, %v1389_v0  ;;  %v1290_v49 = vadd.f32 %v1289_v62, %v1288_v30  ;;  %v1153_v27 = vpop.f32.mrf.mxu0  ;;  %v1396_v33 = vsel %vm605_vm15, %v1358_v28, 0.0  ;;  %v996_v36 = vadd.f32 %v995_v15, %v4178_v34 }
 0x1a6   : > { %v1392_v38 = vsel %vm605_vm15, %v1356_v61, 0.0  ;;  %v4272_v60 = vadd.f32 %v1153_v27, %v980_v26  ;;  %v998_v8 = vpop.f32.mrf.mxu1  ;;  %v1299_v15 = vsel %vm605_vm15, %v4279_v22, 0.0 }
 0x1a7   : > { %v1292_v23 = vadd.f32 %v1291_v13, %v1290_v49  ;;  %v1393_v63 = vadd.f32 %v1392_v38, %v1391_v12  ;;  %v3263_v47 = vpop.f32.mrf.mxu0  ;;  %v1361_v49 = vmul.f32 %v4279_v22, %v4279_v22 }
 0x1a8   : > { %v1359_v30 = vmul.f32 %v4272_v60, %v4272_v60  ;;  %v3236_v26 = vpop.f32.mrf.mxu1  ;;  %v1295_v25 = vsel %vm605_vm15, %v4272_v60, 0.0  ;;  %v4286_v46 = vadd.f32 %v3263_v47, %v991_v20  ;;  %v1004_v20 = vadd.f32 %v3232_v16, %v4176_v35 }
 0x1a9   : > { %v1395_v0 = vadd.f32 %v1394_v53, %v1393_v63  ;;  %v1294_v11 = vadd.f32 %v1293_v18, %v1292_v23  ;;  %v1156_v62 = vpop.f32.mrf.mxu0 }
 0x1aa   : > { %v4288_v54 = vadd.f32 %v1156_v62, %v983_v51  ;;  %v1011_v42 = vpop.f32.mrf.mxu1  ;;  %v1398_v27 = vsel %vm605_vm15, %v1359_v30, 0.0  ;;  %v1362_v63 = vmul.f32 %v4286_v46, %v4286_v46  ;;  %v1007_v30 = vadd.f32 %v3233_v7, %v4180_v57 }
 0x1ab   : > { %v1296_v61 = vadd.f32 %v1295_v25, %v1294_v11  ;;  %v1397_v6 = vadd.f32 %v1396_v33, %v1395_v0  ;;  %v3266_v12 = vpop.f32.mrf.mxu0  ;;  %v999_v0 = vadd.f32 %v998_v8, %v4182_v21  ;;  %v1402_v62 = vsel %vm605_vm15, %v1361_v49, 0.0 }
 0x1ac   : > { %v1297_v13 = vsel %vm605_vm15, %v4288_v54, 0.0  ;;  %v1360_v28 = vmul.f32 %v4288_v54, %v4288_v54  ;;  %v3237_v38 = vpop.f32.mrf.mxu1  ;;  %v1301_v33 = vsel %vm605_vm15, %v4286_v46, 0.0  ;;  %v4311_v25 = vadd.f32 %v3266_v12, %v1004_v20 }
 0x1ad   : > { %v1399_v51 = vadd.f32 %v1398_v27, %v1397_v6  ;;  %v1298_v23 = vadd.f32 %v1297_v13, %v1296_v61  ;;  %v1169_v34 = vpop.f32.mrf.mxu0  ;;  %v1404_v57 = vsel %vm605_vm15, %v1362_v63, 0.0  ;;  %v1012_v12 = vadd.f32 %v1011_v42, %v4186_v31 }
 0x1ae   : > { %v1400_v47 = vsel %vm605_vm15, %v1360_v28, 0.0  ;;  %v4304_v53 = vadd.f32 %v1169_v34, %v996_v36  ;;  %v1014_v18 = vpop.f32.mrf.mxu1  ;;  %v1307_v42 = vsel %vm605_vm15, %v4311_v25, 0.0 }
 0x1af   : > { %v1300_v11 = vadd.f32 %v1299_v15, %v1298_v23  ;;  %v1401_v35 = vadd.f32 %v1400_v47, %v1399_v51  ;;  %v3267_v16 = vpop.f32.mrf.mxu0  ;;  %v1365_v23 = vmul.f32 %v4311_v25, %v4311_v25 }
 0x1b0   : > { %v1363_v61 = vmul.f32 %v4304_v53, %v4304_v53  ;;  %v3240_v36 = vpop.f32.mrf.mxu1  ;;  %v1303_v21 = vsel %vm605_vm15, %v4304_v53, 0.0  ;;  %v4318_v7 = vadd.f32 %v3267_v16, %v1007_v30  ;;  %v1020_v30 = vadd.f32 %v3236_v26, %v4184_v50 }
 0x1b1   : > { %v1403_v6 = vadd.f32 %v1402_v62, %v1401_v35  ;;  %v1302_v27 = vadd.f32 %v1301_v33, %v1300_v11  ;;  %v1172_v13 = vpop.f32.mrf.mxu0 }
 0x1b2   : > { %v4320_v8 = vadd.f32 %v1172_v13, %v999_v0  ;;  %v1027_v49 = vpop.f32.mrf.mxu1  ;;  %v1406_v34 = vsel %vm605_vm15, %v1363_v61, 0.0  ;;  %v1366_v35 = vmul.f32 %v4318_v7, %v4318_v7  ;;  %v1023_v61 = vadd.f32 %v3237_v38, %v4188_v55 }
 0x1b3   : > { %v1304_v28 = vadd.f32 %v1303_v21, %v1302_v27  ;;  %v1405_v20 = vadd.f32 %v1404_v57, %v1403_v6  ;;  %v3270_v51 = vpop.f32.mrf.mxu0  ;;  %v1015_v6 = vadd.f32 %v1014_v18, %v4190_v59  ;;  %v1410_v13 = vsel %vm605_vm15, %v1365_v23, 0.0 }
 0x1b4   : > { %v1305_v15 = vsel %vm605_vm15, %v4320_v8, 0.0  ;;  %v1364_v63 = vmul.f32 %v4320_v8, %v4320_v8  ;;  %v3241_v47 = vpop.f32.mrf.mxu1  ;;  %v1309_v57 = vsel %vm605_vm15, %v4318_v7, 0.0  ;;  %v4343_v21 = vadd.f32 %v3270_v51, %v1020_v30 }
 0x1b5   : > { %v1407_v0 = vadd.f32 %v1406_v34, %v1405_v20  ;;  %v1306_v11 = vadd.f32 %v1305_v15, %v1304_v28  ;;  %v1185_v31 = vpop.f32.mrf.mxu0  ;;  %v1412_v55 = vsel %vm605_vm15, %v1366_v35, 0.0  ;;  %v1028_v51 = vadd.f32 %v1027_v49, %v4194_v56 }
 0x1b6   : > { %v1408_v16 = vsel %vm605_vm15, %v1364_v63, 0.0  ;;  %v4336_v62 = vadd.f32 %v1185_v31, %v1012_v12  ;;  %v1030_v33 = vpop.f32.mrf.mxu1  ;;  %v1315_v49 = vsel %vm605_vm15, %v4343_v21, 0.0 }
 0x1b7   : > { %v1308_v27 = vadd.f32 %v1307_v42, %v1306_v11  ;;  %v1409_v50 = vadd.f32 %v1408_v16, %v1407_v0  ;;  %v3271_v26 = vpop.f32.mrf.mxu0  ;;  %v1369_v11 = vmul.f32 %v4343_v21, %v4343_v21 }
 0x1b8   : > { %v1367_v28 = vmul.f32 %v4336_v62, %v4336_v62  ;;  %v3244_v12 = vpop.f32.mrf.mxu1  ;;  %v1311_v59 = vsel %vm605_vm15, %v4336_v62, 0.0  ;;  %v4350_v38 = vadd.f32 %v3271_v26, %v1023_v61  ;;  %v1036_v61 = vadd.f32 %v3240_v36, %v4192_v1 }
 0x1b9   : > { %v1411_v20 = vadd.f32 %v1410_v13, %v1409_v50  ;;  %v1310_v34 = vadd.f32 %v1309_v57, %v1308_v27  ;;  %v1188_v15 = vpop.f32.mrf.mxu0 }
 0x1ba   : > { %v4352_v18 = vadd.f32 %v1188_v15, %v1015_v6  ;;  %v1043_v23 = vpop.f32.mrf.mxu1  ;;  %v1414_v31 = vsel %vm605_vm15, %v1367_v28, 0.0  ;;  %v1370_v50 = vmul.f32 %v4350_v38, %v4350_v38  ;;  %v1039_v28 = vadd.f32 %v3241_v47, %v4196_v58 }
 0x1bb   : > { %v1312_v63 = vadd.f32 %v1311_v59, %v1310_v34  ;;  %v1413_v30 = vadd.f32 %v1412_v55, %v1411_v20  ;;  %v3274_v0 = vpop.f32.mrf.mxu0  ;;  %v1031_v20 = vadd.f32 %v1030_v33, %v4198_v45  ;;  %v1418_v15 = vsel %vm605_vm15, %v1369_v11, 0.0 }
 0x1bc   : > { %v1313_v42 = vsel %vm605_vm15, %v4352_v18, 0.0  ;;  %v1368_v35 = vmul.f32 %v4352_v18, %v4352_v18  ;;  %v3245_v16 = vpop.f32.mrf.mxu1  ;;  %v1317_v55 = vsel %vm605_vm15, %v4350_v38, 0.0  ;;  %v4375_v59 = vadd.f32 %v3274_v0, %v1036_v61 }
 0x1bd   : > { %v1415_v6 = vadd.f32 %v1414_v31, %v1413_v30  ;;  %v1314_v27 = vadd.f32 %v1313_v42, %v1312_v63  ;;  %v1201_v56 = vpop.f32.mrf.mxu0  ;;  %v1420_v58 = vsel %vm605_vm15, %v1370_v50, 0.0  ;;  %v1044_v11 = vadd.f32 %v1043_v23, %v4202_v39 }
 0x1be   : > { %v1416_v26 = vsel %vm605_vm15, %v1368_v35, 0.0  ;;  %v4368_v13 = vadd.f32 %v1201_v56, %v1028_v51  ;;  %v1046_v57 = vpop.f32.mrf.mxu1  ;;  %v1052_v39 = vadd.f32 %v3244_v12, %v4200_v48  ;;  %v1055_v23 = vadd.f32 %v3245_v16, %v4204_v41 }
 0x1bf   : > { %v1316_v34 = vadd.f32 %v1315_v49, %v1314_v27  ;;  %v1417_v1 = vadd.f32 %v1416_v26, %v1415_v6  ;;  %v3275_v36 = vpop.f32.mrf.mxu0  ;;  %v3407_v6 = vld [vmem:[%s5681_s2 + $0x8] sm:$0x3f]   ;;  %v1373_v27 = vmul.f32 %v4375_v59, %v4375_v59 }
 0x1c0   : > { %v1371_v63 = vmul.f32 %v4368_v13, %v4368_v13  ;;  %v3248_v51 = vpop.f32.mrf.mxu1  ;;  %v1319_v45 = vsel %vm605_vm15, %v4368_v13, 0.0  ;;  %v4382_v47 = vadd.f32 %v3275_v36, %v1039_v28  ;;  %3389 = vmatprep.subr.msk.bf16.mxu1 %vm738_vm3, %v3407_v6  ;;  %v2055_v16 = vsel %vm738_vm3, %v3407_v6, 0 }
 0x1c1   : > { %v1419_v30 = vadd.f32 %v1418_v15, %v1417_v1  ;;  %v1318_v31 = vadd.f32 %v1317_v55, %v1316_v34  ;;  %v1204_v42 = vpop.f32.mrf.mxu0  ;;  %v1323_v1 = vsel %vm605_vm15, %v4375_v59, 0.0  ;;  %3285 = vmatpush3.bf16.msra.mxu1 %v2055_v16 }
 0x1c2   : > { %v4384_v33 = vadd.f32 %v1204_v42, %v1031_v20  ;;  %v1422_v56 = vsel %vm605_vm15, %v1371_v63, 0.0  ;;  %v1059_v26 = vpop.f32.mrf.mxu1  ;;  %v1374_v36 = vmul.f32 %v4382_v47, %v4382_v47  ;;  %v1047_v63 = vadd.f32 %v1046_v57, %v4206_v43 }
 0x1c3   : > { %v1320_v0 = vadd.f32 %v1319_v45, %v1318_v31  ;;  %v1421_v35 = vadd.f32 %v1420_v58, %v1419_v30  ;;  %v3278_v61 = vpop.f32.mrf.mxu0  ;;  %v1426_v30 = vsel %vm605_vm15, %v1373_v27, 0.0  ;;  %v1325_v31 = vsel %vm605_vm15, %v4382_v47, 0.0 }
 0x1c4   : > { %v1321_v49 = vsel %vm605_vm15, %v4384_v33, 0.0  ;;  %v1372_v50 = vmul.f32 %v4384_v33, %v4384_v33  ;;  %v4412_v42 = vadd.f32 %v3278_v61, %v1052_v39  ;;  %v3249_v58 = vpop.f32.mrf.mxu1  ;;  %v1428_v57 = vsel %vm605_vm15, %v1374_v36, 0.0 }
 0x1c5   : > { %v1423_v28 = vadd.f32 %v1422_v56, %v1421_v35  ;;  %v1322_v20 = vadd.f32 %v1321_v49, %v1320_v0  ;;  %v1217_v34 = vpop.f32.mrf.mxu0  ;;  %v1060_v61 = vadd.f32 %v1059_v26, %v4210_v3 }
 0x1c6   : > { %v1424_v15 = vsel %vm605_vm15, %v1372_v50, 0.0  ;;  %v4405_v55 = vadd.f32 %v1217_v34, %v1044_v11  ;;  %v1377_v39 = vmul.f32 %v4412_v42, %v4412_v42  ;;  %v1331_v26 = vsel %vm605_vm15, %v4412_v42, 0.0 }
 0x1c7   : > { %v1324_v48 = vadd.f32 %v1323_v1, %v1322_v20  ;;  %v1425_v12 = vadd.f32 %v1424_v15, %v1423_v28  ;;  %v3279_v41 = vpop.f32.mrf.mxu0  ;;  %v1062_v20 = vpop.f32.mrf.mxu1  ;;  %v1068_v1 = vadd.f32 %v3248_v51, %v4208_v9 }
 0x1c8   : > { %v1375_v45 = vmul.f32 %v4405_v55, %v4405_v55  ;;  %v1327_v35 = vsel %vm605_vm15, %v4405_v55, 0.0  ;;  %v4419_v6 = vadd.f32 %v3279_v41, %v1055_v23  ;;  %v1071_v41 = vadd.f32 %v3249_v58, %v4212_v24 }
 0x1c9   : > { %v1427_v11 = vadd.f32 %v1426_v30, %v1425_v12  ;;  %v1326_v0 = vadd.f32 %v1325_v31, %v1324_v48  ;;  %v1220_v43 = vpop.f32.mrf.mxu0  ;;  %v1063_v16 = vadd.f32 %v1062_v20, %v4214_v37  ;;  %v1434_v51 = vsel %vm605_vm15, %v1377_v39, 0.0 }
 0x1ca   : > { %v4421_v27 = vadd.f32 %v1220_v43, %v1047_v63  ;;  %v1430_v28 = vsel %vm605_vm15, %v1375_v45, 0.0  ;;  %v1378_v63 = vmul.f32 %v4419_v6, %v4419_v6  ;;  %v1333_v45 = vsel %vm605_vm15, %v4419_v6, 0.0 }
 0x1cb   : > { %v1328_v56 = vadd.f32 %v1327_v35, %v1326_v0  ;;  %v1429_v49 = vadd.f32 %v1428_v57, %v1427_v11  ;;  %v3282_v50 = vpop.f32.mrf.mxu0 }
 0x1cc   : > { %v1329_v34 = vsel %vm605_vm15, %v4421_v27, 0.0  ;;  %v1376_v23 = vmul.f32 %v4421_v27, %v4421_v27  ;;  %v4444_v11 = vadd.f32 %v3282_v50, %v1068_v1  ;;  %v1436_v24 = vsel %vm605_vm15, %v1378_v63, 0.0 }
 0x1cd   : > { %v1431_v36 = vadd.f32 %v1430_v28, %v1429_v49  ;;  %v1330_v15 = vadd.f32 %v1329_v34, %v1328_v56  ;;  %v1233_v3 = vpop.f32.mrf.mxu0 }
 0x1ce   : > { %v1432_v48 = vsel %vm605_vm15, %v1376_v23, 0.0  ;;  %v4437_v12 = vadd.f32 %v1233_v3, %v1060_v61  ;;  %v1381_v50 = vmul.f32 %v4444_v11, %v4444_v11  ;;  %v1339_v1 = vsel %vm605_vm15, %v4444_v11, 0.0 }
 0x1cf   : > { %v1332_v30 = vadd.f32 %v1331_v26, %v1330_v15  ;;  %v1433_v31 = vadd.f32 %v1432_v48, %v1431_v36  ;;  %v3283_v9 = vpop.f32.mrf.mxu0 }
 0x1d0   : > { %v1379_v0 = vmul.f32 %v4437_v12, %v4437_v12  ;;  %v1335_v37 = vsel %vm605_vm15, %v4437_v12, 0.0  ;;  %v4451_v58 = vadd.f32 %v3283_v9, %v1071_v41  ;;  %v1442_v63 = vsel %vm605_vm15, %v1381_v50, 0.0 }
 0x1d1   : > { %v1435_v43 = vadd.f32 %v1434_v51, %v1433_v31  ;;  %v1334_v57 = vadd.f32 %v1333_v45, %v1332_v30  ;;  %v1236_v35 = vpop.f32.mrf.mxu0 }
 0x1d2   : > { %v4453_v61 = vadd.f32 %v1236_v35, %v1063_v16  ;;  %v1438_v39 = vsel %vm605_vm15, %v1379_v0, 0.0  ;;  %v1382_v36 = vmul.f32 %v4451_v58, %v4451_v58  ;;  %v1341_v48 = vsel %vm605_vm15, %v4451_v58, 0.0 }
 0x1d3   : > { %v1336_v56 = vadd.f32 %v1335_v37, %v1334_v57  ;;  %v1437_v49 = vadd.f32 %v1436_v24, %v1435_v43 }
 0x1d4   : > { %v1337_v28 = vsel %vm605_vm15, %v4453_v61, 0.0  ;;  %v1380_v20 = vmul.f32 %v4453_v61, %v4453_v61  ;;  %v1444_v30 = vsel %vm605_vm15, %v1382_v36, 0.0 }
 0x1d5   : > { %v1439_v34 = vadd.f32 %v1438_v39, %v1437_v49  ;;  %v1338_v23 = vadd.f32 %v1337_v28, %v1336_v56 }
 0x1d6   : > { %v1440_v15 = vsel %vm605_vm15, %v1380_v20, 0.0 }
 0x1d7   : > { %v1340_v3 = vadd.f32 %v1339_v1, %v1338_v23  ;;  %v1441_v26 = vadd.f32 %v1440_v15, %v1439_v34 }
 0x1d9   : > { %v1342_v41 = vadd.f32 %v1341_v48, %v1340_v3  ;;  %v1443_v16 = vadd.f32 %v1442_v63, %v1441_v26 }
 0x1db   : > { %v1343_v31 = vrot.slane %v1342_v41, 4  ;;  %v1445_v9 = vadd.f32 %v1444_v30, %v1443_v16 }
 0x1dd   : > { %v1344_v51 = vadd.f32 %v1343_v31, %v1342_v41  ;;  %v1446_v45 = vrot.slane %v1445_v9, 4 }
 0x1df   : > { %v1345_v0 = vrot.slane %v1344_v51, 2  ;;  %v1447_v43 = vadd.f32 %v1446_v45, %v1445_v9 }
 0x1e1   : > { %v1346_v57 = vadd.f32 %v1345_v0, %v1344_v51  ;;  %v1448_v35 = vrot.slane %v1447_v43, 2 }
 0x1e3   : > { %v1347_v24 = vrot.slane %v1346_v57, 1  ;;  %v1449_v37 = vadd.f32 %v1448_v35, %v1447_v43 }
 0x1e5   : > { %v1348_v56 = vadd.f32 %v1347_v24, %v1346_v57  ;;  %v1450_v49 = vrot.slane %v1449_v37, 1 }
 0x1e7   : > { %v4471_v50 = vmul.f32 0.00390625, %v1348_v56  ;;  %v1451_v39 = vadd.f32 %v1450_v49, %v1449_v37 }
 0x1e9   : > { %v1452_v28 = vmul.f32 0.00390625, %v1451_v39  ;;  %v1453_v20 = vmul.f32 %v4471_v50, %v4471_v50  ;;  %v1484_v34 = vsub.f32 %v4437_v12, %v4471_v50  ;;  %v1485_v23 = vsub.f32 %v4453_v61, %v4471_v50 }
 0x1ea   : > { %v1465_v36 = vsub.f32 %v4288_v54, %v4471_v50  ;;  %v1468_v3 = vsub.f32 %v4304_v53, %v4471_v50  ;;  %v1469_v26 = vsub.f32 %v4320_v8, %v4471_v50  ;;  %v1470_v63 = vsub.f32 %v4311_v25, %v4471_v50 }
 0x1eb   : > { %v1454_v1 = vsub.f32 %v1452_v28, %v1453_v20  ;;  %v1471_v12 = vsub.f32 %v4318_v7, %v4471_v50  ;;  %v1472_v61 = vsub.f32 %v4336_v62, %v4471_v50  ;;  %v1473_v48 = vsub.f32 %v4352_v18, %v4471_v50 }
 0x1ec   : > { %v1474_v41 = vsub.f32 %v4343_v21, %v4471_v50  ;;  %v1475_v53 = vsub.f32 %v4350_v38, %v4471_v50  ;;  %v1476_v8 = vsub.f32 %v4368_v13, %v4471_v50  ;;  %v1477_v16 = vsub.f32 %v4384_v33, %v4471_v50 }
 0x1ed   : > { %v1455_v15 = vmax.f32 %v1454_v1, 0.0  ;;  %v1478_v30 = vsub.f32 %v4375_v59, %v4471_v50  ;;  %v1480_v18 = vsub.f32 %v4405_v55, %v4471_v50  ;;  %v1481_v31 = vsub.f32 %v4421_v27, %v4471_v50 }
 0x1ee   : > { %v1456_v45 = vsub.f32 %v4216_v19, %v4471_v50  ;;  %v1457_v55 = vsub.f32 %v4224_v44, %v4471_v50  ;;  %v1458_v27 = vsub.f32 %v4218_v5, %v4471_v50  ;;  %v1459_v0 = vsub.f32 %v4222_v17, %v4471_v50  ;;  %v4534_v19 = vld [vmem:[%s5681_s2] sm:$0x3f]  }
 0x1ef   : > { %v1488_v54 = vadd.f32 1e-05, %v1455_v15  ;;  %v1460_v43 = vsub.f32 %v4240_v52, %v4471_v50  ;;  %v1461_v57 = vsub.f32 %v4256_v10, %v4471_v50  ;;  %v1462_v35 = vsub.f32 %v4247_v2, %v4471_v50  ;;  %3390 = vmatprep.subr.msk.bf16.mxu0 %vm738_vm3, %v4534_v19 }
 0x1f0   : > { %v1463_v5 = vsub.f32 %v4254_v4, %v4471_v50  ;;  %v1464_v17 = vsub.f32 %v4272_v60, %v4471_v50  ;;  %v1466_v52 = vsub.f32 %v4279_v22, %v4471_v50  ;;  %v1467_v10 = vsub.f32 %v4286_v46, %v4471_v50 }
 0x1f1   : > { %3410 = vrsqrt.f32 %v1488_v54 }
 0x1fe   : > { %v4536_v44 = vpop.eup %3410 }
 0x1ff   : > { %v1518_v24 = vmul.f32 %v4536_v44, %v1484_v34  ;;  %v1519_v37 = vmul.f32 %v4536_v44, %v1485_v23  ;;  %v1492_v56 = vmul.f32 %v4536_v44, %v1458_v27  ;;  %v1493_v49 = vmul.f32 %v4536_v44, %v1459_v0 }
 0x200   : > { %v1494_v39 = vmul.f32 %v4536_v44, %v1460_v43  ;;  %v1495_v60 = vmul.f32 %v4536_v44, %v1461_v57  ;;  %v1498_v28 = vmul.f32 %v4536_v44, %v1464_v17  ;;  %v1499_v20 = vmul.f32 %v4536_v44, %v1465_v36 }
 0x201   : > { %v1550_v1 = vmax.f32 %v1518_v24, 0.0  ;;  %v1551_v15 = vmax.f32 %v1519_v37, 0.0  ;;  %v1524_v34 = vmax.f32 %v1492_v56, 0.0  ;;  %v1525_v54 = vmax.f32 %v1493_v49, 0.0 }
 0x202   : > { %v1502_v23 = vmul.f32 %v4536_v44, %v1468_v3  ;;  %v1503_v27 = vmul.f32 %v4536_v44, %v1469_v26  ;;  %v1506_v0 = vmul.f32 %v4536_v44, %v1472_v61  ;;  %v1507_v51 = vmul.f32 %v4536_v44, %v1473_v48 }
 0x203   : > { %v4560_v33 = vpack.c.bf16 %v1551_v15, %v1550_v1  ;;  %v4562_v43 = vpack.c.bf16 %v1525_v54, %v1524_v34  ;;  %v1510_v57 = vmul.f32 %v4536_v44, %v1476_v8  ;;  %v1511_v36 = vmul.f32 %v4536_v44, %v1477_v16  ;;  %v4575_v16 = vld [vmem:[%s5681_s2 + $0x10] sm:$0x3f]  }
 0x204   : > { %v1514_v17 = vmul.f32 %v4536_v44, %v1480_v18  ;;  %v1515_v24 = vmul.f32 %v4536_v44, %v1481_v31  ;;  %v1490_v3 = vmul.f32 %v4536_v44, %v1456_v45  ;;  %v1491_v26 = vmul.f32 %v4536_v44, %v1457_v55  ;;  %5696 = vst [vmem:[#allocation2_spill] sm:$0xff] %v4575_v16 }
 0x205   : > { %1838 = vrot.lane.b32.xlu1 %v4562_v43, %s3456_s20  ;;  %v1526_v61 = vmax.f32 %v1494_v39, 0.0  ;;  %v1527_v48 = vmax.f32 %v1495_v60, 0.0  ;;  %v1530_v37 = vmax.f32 %v1498_v28, 0.0  ;;  %v1531_v56 = vmax.f32 %v1499_v20, 0.0  ;;  %3391 = vmatprep.subr.msk.bf16.mxu1 %vm738_vm3, %v4575_v16 }
 0x206   : > { %v1522_v49 = vmax.f32 %v1490_v3, 0.0  ;;  %v1523_v1 = vmax.f32 %v1491_v26, 0.0  ;;  %v1534_v8 = vmax.f32 %v1502_v23, 0.0  ;;  %v1535_v15 = vmax.f32 %v1503_v27, 0.0 }
 0x207   : > { %v1538_v18 = vmax.f32 %v1506_v0, 0.0  ;;  %v1539_v31 = vmax.f32 %v1507_v51, 0.0  ;;  %v1542_v45 = vmax.f32 %v1510_v57, 0.0  ;;  %v1543_v55 = vmax.f32 %v1511_v36, 0.0 }
 0x208   : > { %v1554_v34 = vpack.c.bf16 %v1523_v1, %v1522_v49  ;;  %v1546_v54 = vmax.f32 %v1514_v17, 0.0  ;;  %v1547_v13 = vmax.f32 %v1515_v24, 0.0  ;;  %v1556_v39 = vpack.c.bf16 %v1527_v48, %v1526_v61 }
 0x209   : > { %v1571_v60 = vshrl.u32 %v4562_v43, 16  ;;  %v1574_v28 = vshll.u32 %v4562_v43, 16  ;;  %v4581_v20 = vpack.c.bf16 %v1531_v56, %v1530_v37  ;;  %v4583_v23 = vpack.c.bf16 %v1535_v15, %v1534_v8 }
 0x20a   : > { %1840 = vrot.lane.b32.xlu0 %v1554_v34, %s3456_s20  ;;  %v1578_v51 = vshrl.u32 %v1554_v34, 16  ;;  %v1581_v27 = vshll.u32 %v1554_v34, 16  ;;  %v1590_v0 = vshll.u32 %v1556_v39, 16  ;;  %v4586_v57 = vpack.c.bf16 %v1539_v31, %v1538_v18 }
 0x20b   : > { %v1573_v36 = vrot.slane %v1571_v60, 7  ;;  %v1718_v17 = vrot.slane %v1574_v28, 1  ;;  %v4588_v24 = vpack.c.bf16 %v1543_v55, %v1542_v45  ;;  %v4590_v3 = vpack.c.bf16 %v1547_v13, %v1546_v54 }
 0x20c   : > { %v1580_v26 = vrot.slane %v1578_v51, 7  ;;  %v1724_v61 = vrot.slane %v1590_v0, 1  ;;  %v4592_v48 = vrot.slane %v1581_v27, 1  ;;  %v1496_v37 = vmul.f32 %v4536_v44, %v1462_v35 }
 0x20d   : > { %v4598_v56 = vor.u32 %v1574_v28, %v1573_v36  ;;  %v4600_v49 = vor.u32 %v1718_v17, %v1571_v60  ;;  %v1497_v1 = vmul.f32 %v4536_v44, %v1463_v5  ;;  %v1587_v13 = vshrl.u32 %v1556_v39, 16 }
 0x20e   : > { %v1583_v8 = vor.u32 %v1581_v27, %v1580_v26  ;;  %v1722_v15 = vor.u32 %v4592_v48, %v1578_v51  ;;  %v1528_v18 = vmax.f32 %v1496_v37, 0.0  ;;  %v1606_v31 = vshll.u32 %v4581_v20, 16 }
 0x20f   : > { %v4610_v2 = vsel %vm229_vm6, %v1580_v26, %v4598_v56  ;;  %v4614_v35 = vsel %vm380_vm8, %v4600_v49, %v1724_v61  ;;  %v1529_v45 = vmax.f32 %v1497_v1, 0.0  ;;  %v1589_v55 = vrot.slane %v1587_v13, 7 }
 0x210   : > { %v1806_v4 = vsel %vm3538_vm9, %v4610_v2, %v4614_v35  ;;  %v4621_v5 = vsel %vm229_vm6, %v1573_v36, %v1583_v8  ;;  %v4624_v34 = vsel %vm380_vm8, %v1722_v15, %v1718_v17  ;;  %v1730_v54 = vrot.slane %v1606_v31, 1 }
 0x211   : > { %1892 = vrot.lane.b32.xlu1 %v1806_v4, %s3457_s21  ;;  %v1805_v60 = vsel %vm3538_vm9, %v4621_v5, %v4624_v34  ;;  %v1557_v28 = vpack.c.bf16 %v1529_v45, %v1528_v18  ;;  %v1592_v51 = vor.u32 %v1590_v0, %v1589_v55  ;;  %v1726_v27 = vor.u32 %v1724_v61, %v1587_v13 }
 0x212   : > { %1890 = vrot.lane.b32.xlu0 %v1805_v60, %s3457_s21  ;;  %v1500_v26 = vmul.f32 %v4536_v44, %v1466_v52  ;;  %v1501_v17 = vmul.f32 %v4536_v44, %v1467_v10  ;;  %v1603_v37 = vshrl.u32 %v4581_v20, 16  ;;  %v1622_v1 = vshll.u32 %v4583_v23, 16 }
 0x213   : > { %v1595_v8 = vshrl.u32 %v1557_v28, 16  ;;  %v1598_v15 = vshll.u32 %v1557_v28, 16  ;;  %v4643_v0 = vsel %vm229_vm6, %v1573_v36, %v1592_v51  ;;  %v1504_v22 = vmul.f32 %v4536_v44, %v1470_v63 }
 0x214   : > { %v1532_v52 = vmax.f32 %v1500_v26, 0.0  ;;  %v1533_v61 = vmax.f32 %v1501_v17, 0.0  ;;  %v1605_v13 = vrot.slane %v1603_v37, 7  ;;  %v1736_v46 = vrot.slane %v1622_v1, 1 }
 0x215   : > { %1844 = vrot.lane.b32.xlu1 %v1557_v28, %s3456_s20  ;;  %v1597_v10 = vrot.slane %v1595_v8, 7  ;;  %v1727_v18 = vrot.slane %v1598_v15, 1  ;;  %v1732_v45 = vor.u32 %v1730_v54, %v1603_v37  ;;  %v1505_v36 = vmul.f32 %v4536_v44, %v1471_v12 }
 0x216   : > { %1842 = vrot.lane.b32.xlu0 %v1556_v39, %s3456_s20  ;;  %v1559_v4 = vpack.c.bf16 %v1533_v61, %v1532_v52  ;;  %v1608_v25 = vor.u32 %v1606_v31, %v1605_v13  ;;  %v1536_v60 = vmax.f32 %v1504_v22, 0.0  ;;  %v1619_v63 = vshrl.u32 %v4583_v23, 16 }
 0x217   : > { %v1600_v51 = vor.u32 %v1598_v15, %v1597_v10  ;;  %v1729_v26 = vor.u32 %v1727_v18, %v1595_v8  ;;  %v4657_v17 = vsel %vm380_vm8, %v1726_v27, %v1727_v18  ;;  %v1537_v28 = vmax.f32 %v1505_v36, 0.0 }
 0x218   : > { %v1807_v7 = vsel %vm3538_vm9, %v4643_v0, %v4657_v17  ;;  %v1611_v37 = vshrl.u32 %v1559_v4, 16  ;;  %v1614_v12 = vshll.u32 %v1559_v4, 16  ;;  %v4664_v39 = vsel %vm229_vm6, %v1597_v10, %v1608_v25 }
 0x219   : > { %v4667_v31 = vsel %vm229_vm6, %v1589_v55, %v1600_v51  ;;  %v4670_v15 = vsel %vm380_vm8, %v1729_v26, %v1730_v54  ;;  %v1561_v8 = vpack.c.bf16 %v1537_v28, %v1536_v60  ;;  %v1621_v27 = vrot.slane %v1619_v63, 7 }
 0x21a   : > { %v1808_v22 = vsel %vm3538_vm9, %v4667_v31, %v4670_v15  ;;  %1894 = vrot.lane.b32.xlu0 %v1807_v7, %s3457_s21  ;;  %v1613_v52 = vrot.slane %v1611_v37, 7  ;;  %v1733_v61 = vrot.slane %v1614_v12, 1  ;;  %v1638_v10 = vshll.u32 %v4586_v57, 16 }
 0x21b   : > { %1896 = vrot.lane.b32.xlu1 %v1808_v22, %s3457_s21  ;;  %v1627_v55 = vshrl.u32 %v1561_v8, 16  ;;  %v1630_v18 = vshll.u32 %v1561_v8, 16  ;;  %v1624_v36 = vor.u32 %v1622_v1, %v1621_v27  ;;  %v1738_v54 = vor.u32 %v1736_v46, %v1619_v63 }
 0x21c   : > { %v1616_v25 = vor.u32 %v1614_v12, %v1613_v52  ;;  %v1735_v60 = vor.u32 %v1733_v61, %v1611_v37  ;;  %v4680_v51 = vsel %vm380_vm8, %v1732_v45, %v1733_v61  ;;  %v1742_v26 = vrot.slane %v1638_v10, 1 }
 0x21d   : > { %v1809_v28 = vsel %vm3538_vm9, %v4664_v39, %v4680_v51  ;;  %v1629_v7 = vrot.slane %v1627_v55, 7  ;;  %v1739_v9 = vrot.slane %v1630_v18, 1  ;;  %v4687_v62 = vsel %vm229_vm6, %v1613_v52, %v1624_v36 }
 0x21e   : > { %1846 = vrot.lane.b32.xlu0 %v4581_v20, %s3456_s20  ;;  %v4692_v1 = vsel %vm229_vm6, %v1605_v13, %v1616_v25  ;;  %v4695_v45 = vsel %vm380_vm8, %v1735_v60, %v1736_v46  ;;  %v1508_v63 = vmul.f32 %v4536_v44, %v1474_v41  ;;  %v1509_v37 = vmul.f32 %v4536_v44, %v1475_v53 }
 0x21f   : > { %1848 = vrot.lane.b32.xlu1 %v1559_v4, %s3456_s20  ;;  %v1810_v20 = vsel %vm3538_vm9, %v4692_v1, %v4695_v45  ;;  %v1632_v13 = vor.u32 %v1630_v18, %v1629_v7  ;;  %v1741_v46 = vor.u32 %v1739_v9, %v1627_v55  ;;  %v4711_v12 = vsel %vm380_vm8, %v1738_v54, %v1739_v9 }
 0x220   : > { %v1811_v21 = vsel %vm3538_vm9, %v4687_v62, %v4711_v12  ;;  %v1540_v38 = vmax.f32 %v1508_v63, 0.0  ;;  %v1541_v41 = vmax.f32 %v1509_v37, 0.0  ;;  %v1635_v53 = vshrl.u32 %v4586_v57, 16 }
 0x221   : > { %v4719_v4 = vsel %vm229_vm6, %v1621_v27, %v1632_v13  ;;  %v4722_v22 = vsel %vm380_vm8, %v1741_v46, %v1742_v26  ;;  %v1654_v52 = vshll.u32 %v4588_v24, 16  ;;  %v1512_v9 = vmul.f32 %v4536_v44, %v1478_v30 }
 0x222   : > { %1898 = vrot.lane.b32.xlu0 %v1809_v28, %s3457_s21  ;;  %v1812_v61 = vsel %vm3538_vm9, %v4719_v4, %v4722_v22  ;;  %v1563_v55 = vpack.c.bf16 %v1541_v41, %v1540_v38  ;;  %v1637_v27 = vrot.slane %v1635_v53, 7  ;;  %v1744_v18 = vor.u32 %v1742_v26, %v1635_v53 }
 0x223   : > { %1900 = vrot.lane.b32.xlu1 %v1810_v20, %s3457_s21  ;;  %v1748_v36 = vrot.slane %v1654_v52, 1  ;;  %v5697_v54 = vsub.f32 %v4382_v47, %v4471_v50  ;;  %v1544_v25 = vmax.f32 %v1512_v9, 0.0  ;;  %v1651_v30 = vshrl.u32 %v4588_v24, 16 }
 0x224   : > { %v1643_v60 = vshrl.u32 %v1563_v55, 16  ;;  %v1646_v28 = vshll.u32 %v1563_v55, 16  ;;  %v1640_v63 = vor.u32 %v1638_v10, %v1637_v27  ;;  %v1670_v37 = vshll.u32 %v4590_v3, 16 }
 0x225   : > { %v1513_v59 = vmul.f32 %v4536_v44, %v5697_v54  ;;  %v1653_v46 = vrot.slane %v1651_v30, 7  ;;  %v1750_v38 = vor.u32 %v1748_v36, %v1651_v30  ;;  %v5698_v26 = vsub.f32 %v4412_v42, %v4471_v50 }
 0x226   : > { %1850 = vrot.lane.b32.xlu0 %v4583_v23, %s3456_s20  ;;  %v1645_v47 = vrot.slane %v1643_v60, 7  ;;  %v1745_v41 = vrot.slane %v1646_v28, 1  ;;  %v4748_v53 = vsel %vm229_vm6, %v1629_v7, %v1640_v63  ;;  %v1754_v9 = vrot.slane %v1670_v37, 1 }
 0x227   : > { %v1545_v13 = vmax.f32 %v1513_v59, 0.0  ;;  %v1516_v20 = vmul.f32 %v4536_v44, %v5698_v26  ;;  %1852 = vrot.lane.b32.xlu1 %v1561_v8, %s3456_s20  ;;  %v1656_v54 = vor.u32 %v1654_v52, %v1653_v46  ;;  %v5699_v59 = vsub.f32 %v4419_v6, %v4471_v50 }
 0x228   : > { %v1648_v26 = vor.u32 %v1646_v28, %v1645_v47  ;;  %v1747_v16 = vor.u32 %v1745_v41, %v1643_v60  ;;  %v4758_v23 = vsel %vm380_vm8, %v1744_v18, %v1745_v41  ;;  %v1667_v7 = vshrl.u32 %v4590_v3, 16 }
 0x229   : > { %v4751_v10 = vpack.c.bf16 %v1545_v13, %v1544_v25  ;;  %v1517_v42 = vmul.f32 %v4536_v44, %v5699_v59  ;;  %v1548_v30 = vmax.f32 %v1516_v20, 0.0  ;;  %v1813_v8 = vsel %vm3538_vm9, %v4748_v53, %v4758_v23 }
 0x22a   : > { %v4768_v6 = vsel %vm229_vm6, %v1645_v47, %v1656_v54  ;;  %1902 = vrot.lane.b32.xlu0 %v1811_v21, %s3457_s21  ;;  %v4772_v60 = vsel %vm229_vm6, %v1637_v27, %v1648_v26  ;;  %v4775_v18 = vsel %vm380_vm8, %v1747_v16, %v1748_v36  ;;  %v1669_v63 = vrot.slane %v1667_v7, 7 }
 0x22b   : > { %v1659_v52 = vshrl.u32 %v4751_v10, 16  ;;  %v1662_v25 = vshll.u32 %v4751_v10, 16  ;;  %v1549_v28 = vmax.f32 %v1517_v42, 0.0  ;;  %1904 = vrot.lane.b32.xlu1 %v1812_v61, %s3457_s21  ;;  %v1814_v13 = vsel %vm3538_vm9, %v4772_v60, %v4775_v18 }
 0x22c   : > { %v1686_v41 = vshll.u32 %v4560_v33, 16  ;;  %v1672_v27 = vor.u32 %v1670_v37, %v1669_v63  ;;  %v1756_v54 = vor.u32 %v1754_v9, %v1667_v7  ;;  %v5700_v16 = vsub.f32 %v4444_v11, %v4471_v50 }
 0x22d   : > { %v1661_v20 = vrot.slane %v1659_v52, 7  ;;  %v1751_v47 = vrot.slane %v1662_v25, 1  ;;  %v4783_v21 = vpack.c.bf16 %v1549_v28, %v1548_v30  ;;  %v1790_v29 = vsel %vm3721_vm10, %v4670_v15, %v4667_v31 }
 0x22e   : > { %v1520_v36 = vmul.f32 %v4536_v44, %v5700_v16  ;;  %v4792_v26 = vrot.slane %v1686_v41, 1  ;;  %1854 = vrot.lane.b32.xlu0 %v4586_v57, %s3456_s20  ;;  %v5701_v57 = vsub.f32 %v4451_v58, %v4471_v50  ;;  %v4830_v58 = vsel %vm380_vm8, %v4600_v49, %v4592_v48 }
 0x22f   : > { %v1664_v59 = vor.u32 %v1662_v25, %v1661_v20  ;;  %v1753_v61 = vor.u32 %v1751_v47, %v1659_v52  ;;  %v4790_v42 = vsel %vm380_vm8, %v1750_v38, %v1751_v47  ;;  %v1675_v30 = vshrl.u32 %v4783_v21, 16  ;;  %1856 = vrot.lane.b32.xlu1 %v1563_v55, %s3456_s20 }
 0x230   : > { %v1815_v37 = vsel %vm3538_vm9, %v4768_v6, %v4790_v42  ;;  %v1678_v11 = vshll.u32 %v4783_v21, 16  ;;  %v4803_v7 = vsel %vm229_vm6, %v1661_v20, %v1672_v27  ;;  %v1521_v25 = vmul.f32 %v4536_v44, %v5701_v57 }
 0x231   : > { %v4807_v38 = vsel %vm229_vm6, %v1653_v46, %v1664_v59  ;;  %v4810_v52 = vsel %vm380_vm8, %v1753_v61, %v1754_v9  ;;  %v1552_v28 = vmax.f32 %v1520_v36, 0.0  ;;  %v1677_v47 = vrot.slane %v1675_v30, 7 }
 0x232   : > { %v1816_v20 = vsel %vm3538_vm9, %v4807_v38, %v4810_v52  ;;  %v1757_v27 = vrot.slane %v1678_v11, 1  ;;  %v1683_v55 = vshrl.u32 %v4560_v33, 16  ;;  %v1553_v46 = vmax.f32 %v1521_v25, 0.0  ;;  %1906 = vrot.lane.b32.xlu0 %v1813_v8, %s3457_s21 }
 0x233   : > { %v4825_v9 = vsel %vm3767_vm13, %v4562_v43, %v4598_v56  ;;  %v1788_v50 = vsel %vm3721_vm10, %v4614_v35, %v4610_v2  ;;  %v1680_v44 = vor.u32 %v1678_v11, %v1677_v47  ;;  %1908 = vrot.lane.b32.xlu1 %v1814_v13, %s3457_s21  ;;  %v1787_v57 = vsel %vm3721_vm10, %v4624_v34, %v4621_v5 }
 0x234   : > { %v1759_v16 = vor.u32 %v1757_v27, %v1675_v30  ;;  %v4838_v36 = vsel %vm380_vm8, %v1756_v54, %v1757_v27  ;;  %v1685_v32 = vrot.slane %v1683_v55, 7  ;;  %v1569_v48 = vpack.c.bf16 %v1553_v46, %v1552_v28 }
 0x235   : > { %v1817_v43 = vsel %vm3538_vm9, %v4803_v7, %v4838_v36  ;;  %v1762_v56 = vor.u32 %v4792_v26, %v1683_v55  ;;  %v1804_v49 = vsel %vm3538_vm9, %v4825_v9, %v4830_v58  ;;  %v4851_v8 = vsel %vm229_vm6, %v1669_v63, %v1680_v44 }
 0x236   : > { %v4855_v54 = vsel %vm380_vm8, %v1759_v16, %v4792_v26  ;;  %v1688_v13 = vor.u32 %v1686_v41, %v1685_v32  ;;  %v1786_v59 = vsel %vm3721_vm10, %v4830_v58, %v4825_v9  ;;  %v1691_v30 = vshrl.u32 %v1569_v48, 16  ;;  %1858 = vrot.lane.b32.xlu0 %v4588_v24, %s3456_s20 }
 0x237   : > { %v1818_v61 = vsel %vm3538_vm9, %v4851_v8, %v4855_v54  ;;  %v1694_v11 = vshll.u32 %v1569_v48, 16  ;;  %v4873_v41 = vsel %vm3819_vm14, %v1762_v56, %v4560_v33  ;;  %v2226_v25 = vsel %vm738_vm3, %v4534_v19, 0  ;;  %1860 = vrot.lane.b32.xlu1 %v4751_v10, %s3456_s20 }
 0x238   : > { %v4868_v63 = vsel %vm229_vm6, %v1677_v47, %v1688_v13  ;;  %v1693_v24 = vrot.slane %v1691_v30, 7  ;;  %3319 = vmatpush3.bf16.msra.mxu0 %v2226_v25  ;;  %v1789_v47 = vsel %vm3721_vm10, %v4657_v17, %v4643_v0  ;;  %v1792_v19 = vsel %vm3721_vm10, %v4695_v45, %v4692_v1 }
 0x239   : > { %v1763_v28 = vrot.slane %v1694_v11, 1  ;;  %v1791_v5 = vsel %vm3721_vm10, %v4680_v51, %v4664_v39  ;;  %v1794_v34 = vsel %vm3721_vm10, %v4722_v22, %v4719_v4  ;;  %v1793_v0 = vsel %vm3721_vm10, %v4711_v12, %v4687_v62 }
 0x23a   : > { %v1696_v17 = vor.u32 %v1694_v11, %v1693_v24  ;;  %v4911_v1 = vsel %vm229_vm6, %v1693_v24, %v1688_v13  ;;  %1910 = vrot.lane.b32.xlu0 %v1815_v37, %s3457_s21  ;;  %v1796_v45 = vsel %vm3721_vm10, %v4775_v18, %v4772_v60  ;;  %v1795_v10 = vsel %vm3721_vm10, %v4758_v23, %v4748_v53 }
 0x23b   : > { %v1765_v31 = vor.u32 %v1763_v28, %v1691_v30  ;;  %v4908_v15 = vsel %vm380_vm8, %v1762_v56, %v1763_v28  ;;  %v1821_v51 = vsel %vm3538_vm9, %v4911_v1, %v4873_v41  ;;  %1912 = vrot.lane.b32.xlu1 %v1816_v20, %s3457_s21  ;;  %v1798_v55 = vsel %vm3721_vm10, %v4810_v52, %v4807_v38 }
 0x23c   : > { %v1819_v39 = vsel %vm3538_vm9, %v4868_v63, %v4908_v15  ;;  %v4932_v37 = vsel %vm229_vm6, %v1685_v32, %v1696_v17  ;;  %v1797_v46 = vsel %vm3721_vm10, %v4790_v42, %v4768_v6  ;;  %v1799_v44 = vsel %vm3721_vm10, %v4838_v36, %v4803_v7 }
 0x23d   : > { %v4936_v27 = vsel %vm380_vm8, %v1765_v31, %v4792_v26  ;;  %v1800_v26 = vsel %vm3721_vm10, %v4855_v54, %v4851_v8  ;;  %v1801_v40 = vsel %vm3721_vm10, %v4908_v15, %v4868_v63  ;;  %v1803_v32 = vsel %vm3721_vm10, %v4873_v41, %v4911_v1 }
 0x23e   : > { %v1820_v20 = vsel %vm3538_vm9, %v4932_v37, %v4936_v27  ;;  %v1802_v16 = vsel %vm3721_vm10, %v4936_v27, %v4932_v37  ;;  %1862 = vrot.lane.b32.xlu0 %v4590_v3, %s3456_s20 }
 0x23f   : > { %1864 = vrot.lane.b32.xlu1 %v4783_v21, %s3456_s20 }
 0x242   : > { %1914 = vrot.lane.b32.xlu0 %v1817_v43, %s3457_s21 }
 0x243   : > { %1916 = vrot.lane.b32.xlu1 %v1818_v61, %s3457_s21  ;;  %v5702_v61 = vld [vmem:[#allocation2_spill] sm:$0xff] }
 0x244   : > { %v2400_v30 = vsel %vm738_vm3, %v5702_v61, 0 }
 0x246   : > { %1866 = vrot.lane.b32.xlu0 %v4560_v33, %s3456_s20 }
 0x247   : > { %1868 = vrot.lane.b32.xlu1 %v1569_v48, %s3456_s20 }
 0x24a   : > { %1918 = vrot.lane.b32.xlu0 %v1819_v39, %s3457_s21 }
 0x24b   : > { %1920 = vrot.lane.b32.xlu1 %v1820_v20, %s3457_s21 }
 0x24e   : > { %1888 = vrot.lane.b32.xlu0 %v1804_v49, %s3457_s21 }
 0x24f   : > { %1922 = vrot.lane.b32.xlu1 %v1821_v51, %s3457_s21 }
 0x277   : > { %v4983_v3 = vpop.permute.xlu1 %1838 }
 0x278   : > { %v1931_v33 = vsel %vm605_vm15, %v1788_v50, %v4983_v3  ;;  %v1926_v63 = vsel %vm605_vm15, %v1786_v59, %v4983_v3 }
 0x27c   : > { %v1841_v21 = vpop.permute.xlu0 %1840 }
 0x27d   : > { %v1929_v48 = vsel %vm605_vm15, %v1787_v57, %v1841_v21 }
 0x283   : > { %v1893_v43 = vpop.permute.xlu1 %1892 }
 0x284   : > { %v4994_v56 = vsel %vm658_vm0, %v1931_v33, %v1893_v43  ;;  %v1891_v49 = vpop.permute.xlu0 %1890 }
 0x285   : > { %v4997_v13 = vsel %vm658_vm0, %v1929_v48, %v1891_v49 }
 0x286   : > { %3286 = vmatprep.mubr.msk.bf16.mxu1 %vm705_vm1, %v4997_v13 }
 0x287   : > { %3287 = vmatmul.mubr.msk.bf16.vlgmr.msra.gmra.mxu1 %vm705_vm1, %v4994_v56  ;;  %v1845_v2 = vpop.permute.xlu1 %1844 }
 0x288   : > { %3353 = vmatpush3.bf16.msra.mxu1 %v2400_v30  ;;  %v1843_v35 = vpop.permute.xlu0 %1842  ;;  %v1937_v57 = vsel %vm605_vm15, %v1790_v29, %v1845_v2 }
 0x289   : > { %v1934_v50 = vsel %vm605_vm15, %v1789_v47, %v1843_v35 }
 0x28c   : > { %v1895_v11 = vpop.permute.xlu0 %1894 }
 0x28d   : > { %v1897_v25 = vpop.permute.xlu1 %1896  ;;  %v5008_v24 = vsel %vm658_vm0, %v1934_v50, %v1895_v11 }
 0x28e   : > { %v5011_v28 = vsel %vm658_vm0, %v1937_v57, %v1897_v25  ;;  %3290 = vmatprep.mubr.msk.bf16.mxu1 %vm705_vm1, %v5008_v24 }
 0x28f   : > { %3291 = vmatmul.mubr.msk.bf16.gmra.mxu1 %vm705_vm1, %v5011_v28 }
 0x290   : > { %v1847_v17 = vpop.permute.xlu0 %1846 }
 0x291   : > { %v1849_v31 = vpop.permute.xlu1 %1848  ;;  %v1940_v47 = vsel %vm605_vm15, %v1791_v5, %v1847_v17 }
 0x292   : > { %v1943_v29 = vsel %vm605_vm15, %v1792_v19, %v1849_v31 }
 0x294   : > { %v1899_v39 = vpop.permute.xlu0 %1898 }
 0x295   : > { %v1901_v51 = vpop.permute.xlu1 %1900  ;;  %v5020_v20 = vsel %vm658_vm0, %v1940_v47, %v1899_v39 }
 0x296   : > { %v5023_v21 = vsel %vm658_vm0, %v1943_v29, %v1901_v51  ;;  %3294 = vmatprep.mubr.msk.bf16.mxu1 %vm705_vm1, %v5020_v20 }
 0x297   : > { %3295 = vmatmul.mubr.msk.bf16.gmra.mxu1 %vm705_vm1, %v5023_v21 }
 0x298   : > { %v1851_v33 = vpop.permute.xlu0 %1850 }
 0x299   : > { %v1853_v43 = vpop.permute.xlu1 %1852  ;;  %v1946_v19 = vsel %vm605_vm15, %v1793_v0, %v1851_v33 }
 0x29a   : > { %v1949_v48 = vsel %vm605_vm15, %v1794_v34, %v1853_v43 }
 0x29c   : > { %v1903_v5 = vpop.permute.xlu0 %1902 }
 0x29d   : > { %v1905_v49 = vpop.permute.xlu1 %1904  ;;  %v1991_v61 = vsel %vm658_vm0, %v1946_v19, %v1903_v5 }
 0x29e   : > { %v1993_v30 = vsel %vm658_vm0, %v1949_v48, %v1905_v49  ;;  %3298 = vmatprep.mubr.msk.bf16.mxu1 %vm705_vm1, %v1991_v61 }
 0x29f   : > { %3299 = vmatmul.mubr.msk.bf16.gmra.mxu1 %vm705_vm1, %v1993_v30 }
 0x2a0   : > { %v1855_v62 = vpop.permute.xlu0 %1854 }
 0x2a1   : > { %v1857_v12 = vpop.permute.xlu1 %1856  ;;  %v1952_v4 = vsel %vm605_vm15, %v1795_v10, %v1855_v62 }
 0x2a2   : > { %v1955_v34 = vsel %vm605_vm15, %v1796_v45, %v1857_v12 }
 0x2a4   : > { %v1907_v22 = vpop.permute.xlu0 %1906 }
 0x2a5   : > { %v1909_v0 = vpop.permute.xlu1 %1908  ;;  %v1995_v2 = vsel %vm658_vm0, %v1952_v4, %v1907_v22 }
 0x2a6   : > { %v1997_v35 = vsel %vm658_vm0, %v1955_v34, %v1909_v0  ;;  %3302 = vmatprep.mubr.msk.bf16.mxu1 %vm705_vm1, %v1995_v2 }
 0x2a7   : > { %3303 = vmatmul.mubr.msk.bf16.gmra.mxu1 %vm705_vm1, %v1997_v35 }
 0x2a8   : > { %v1859_v53 = vpop.permute.xlu0 %1858 }
 0x2a9   : > { %v1861_v23 = vpop.permute.xlu1 %1860  ;;  %v1958_v60 = vsel %vm605_vm15, %v1797_v46, %v1859_v53 }
 0x2aa   : > { %v1961_v45 = vsel %vm605_vm15, %v1798_v55, %v1861_v23 }
 0x2ac   : > { %v1911_v18 = vpop.permute.xlu0 %1910 }
 0x2ad   : > { %v1913_v10 = vpop.permute.xlu1 %1912  ;;  %v1999_v50 = vsel %vm658_vm0, %v1958_v60, %v1911_v18 }
 0x2ae   : > { %v2001_v11 = vsel %vm658_vm0, %v1961_v45, %v1913_v10  ;;  %3306 = vmatprep.mubr.msk.bf16.mxu1 %vm705_vm1, %v1999_v50 }
 0x2af   : > { %3307 = vmatmul.mubr.msk.bf16.gmra.mxu1 %vm705_vm1, %v2001_v11 }
 0x2b0   : > { %v1863_v6 = vpop.permute.xlu0 %1862 }
 0x2b1   : > { %v1865_v42 = vpop.permute.xlu1 %1864  ;;  %v1964_v38 = vsel %vm605_vm15, %v1799_v44, %v1863_v6 }
 0x2b2   : > { %v1967_v55 = vsel %vm605_vm15, %v1800_v26, %v1865_v42 }
 0x2b4   : > { %v1915_v52 = vpop.permute.xlu0 %1914 }
 0x2b5   : > { %v1917_v46 = vpop.permute.xlu1 %1916  ;;  %v2003_v57 = vsel %vm658_vm0, %v1964_v38, %v1915_v52 }
 0x2b6   : > { %v2005_v25 = vsel %vm658_vm0, %v1967_v55, %v1917_v46  ;;  %3310 = vmatprep.mubr.msk.bf16.mxu1 %vm705_vm1, %v2003_v57 }
 0x2b7   : > { %3311 = vmatmul.mubr.msk.bf16.gmra.mxu1 %vm705_vm1, %v2005_v25 }
 0x2b8   : > { %v1867_v7 = vpop.permute.xlu0 %1866 }
 0x2b9   : > { %v1869_v36 = vpop.permute.xlu1 %1868  ;;  %v1975_v8 = vsel %vm605_vm15, %v1803_v32, %v1867_v7  ;;  %v1970_v54 = vsel %vm605_vm15, %v1801_v40, %v1867_v7 }
 0x2ba   : > { %v1973_v44 = vsel %vm605_vm15, %v1802_v16, %v1869_v36 }
 0x2bc   : > { %v1919_v26 = vpop.permute.xlu0 %1918 }
 0x2bd   : > { %v1921_v17 = vpop.permute.xlu1 %1920  ;;  %v2007_v41 = vsel %vm658_vm0, %v1970_v54, %v1919_v26 }
 0x2be   : > { %v2009_v1 = vsel %vm658_vm0, %v1973_v44, %v1921_v17  ;;  %3314 = vmatprep.mubr.msk.bf16.mxu1 %vm705_vm1, %v2007_v41 }
 0x2bf   : > { %3315 = vmatmul.mubr.msk.bf16.gmra.mxu1 %vm705_vm1, %v2009_v1 }
 0x2c0   : > { %v1889_v15 = vpop.permute.xlu0 %1888  ;;  %3354 = vmatprep.mubr.msk.bf16.mxu1 %vm705_vm1, %v4994_v56 }
 0x2c1   : > { %v1977_v37 = vsel %vm658_vm0, %v1926_v63, %v1889_v15  ;;  %v1923_v14 = vpop.permute.xlu1 %1922 }
 0x2c2   : > { %3320 = vmatprep.mubr.msk.bf16.mxu0 %vm705_vm1, %v1977_v37  ;;  %v2011_v9 = vsel %vm658_vm0, %v1975_v8, %v1923_v14 }
 0x2c3   : > { %3321 = vmatmul.mubr.msk.bf16.vlgmr.msra.gmra.mxu0 %vm705_vm1, %v4997_v13 }
 0x2c4   : > { %3324 = vmatprep.mubr.msk.bf16.mxu0 %vm705_vm1, %v4994_v56 }
 0x2c7   : > { %3355 = vmatmul.mubr.msk.bf16.vlgmr.msra.gmra.mxu1 %vm705_vm1, %v5008_v24 }
 0x2c8   : > { %3358 = vmatprep.mubr.msk.bf16.mxu1 %vm705_vm1, %v5011_v28 }
 0x2cb   : > { %3325 = vmatmul.mubr.msk.bf16.gmra.mxu0 %vm705_vm1, %v5008_v24 }
 0x2cc   : > { %3328 = vmatprep.mubr.msk.bf16.mxu0 %vm705_vm1, %v5011_v28 }
 0x2cf   : > { %3359 = vmatmul.mubr.msk.bf16.gmra.mxu1 %vm705_vm1, %v5020_v20 }
 0x2d0   : > { %3362 = vmatprep.mubr.msk.bf16.mxu1 %vm705_vm1, %v5023_v21 }
 0x2d3   : > { %3329 = vmatmul.mubr.msk.bf16.gmra.mxu0 %vm705_vm1, %v5020_v20 }
 0x2d4   : > { %3332 = vmatprep.mubr.msk.bf16.mxu0 %vm705_vm1, %v5023_v21 }
 0x2d7   : > { %3363 = vmatmul.mubr.msk.bf16.gmra.mxu1 %vm705_vm1, %v1991_v61 }
 0x2d8   : > { %3366 = vmatprep.mubr.msk.bf16.mxu1 %vm705_vm1, %v1993_v30 }
 0x2db   : > { %3333 = vmatmul.mubr.msk.bf16.gmra.mxu0 %vm705_vm1, %v1991_v61 }
 0x2dc   : > { %3336 = vmatprep.mubr.msk.bf16.mxu0 %vm705_vm1, %v1993_v30 }
 0x2df   : > { %3367 = vmatmul.mubr.msk.bf16.gmra.mxu1 %vm705_vm1, %v1995_v2 }
 0x2e0   : > { %3370 = vmatprep.mubr.msk.bf16.mxu1 %vm705_vm1, %v1997_v35 }
 0x2e3   : > { %3337 = vmatmul.mubr.msk.bf16.gmra.mxu0 %vm705_vm1, %v1995_v2 }
 0x2e4   : > { %3340 = vmatprep.mubr.msk.bf16.mxu0 %vm705_vm1, %v1997_v35 }
 0x2e7   : > { %3371 = vmatmul.mubr.msk.bf16.gmra.mxu1 %vm705_vm1, %v1999_v50 }
 0x2e8   : > { %3374 = vmatprep.mubr.msk.bf16.mxu1 %vm705_vm1, %v2001_v11 }
 0x2eb   : > { %3341 = vmatmul.mubr.msk.bf16.gmra.mxu0 %vm705_vm1, %v1999_v50 }
 0x2ec   : > { %3344 = vmatprep.mubr.msk.bf16.mxu0 %vm705_vm1, %v2001_v11 }
 0x2ef   : > { %3375 = vmatmul.mubr.msk.bf16.gmra.mxu1 %vm705_vm1, %v2003_v57 }
 0x2f0   : > { %3378 = vmatprep.mubr.msk.bf16.mxu1 %vm705_vm1, %v2005_v25 }
 0x2f3   : > { %3345 = vmatmul.mubr.msk.bf16.gmra.mxu0 %vm705_vm1, %v2003_v57 }
 0x2f4   : > { %3348 = vmatprep.mubr.msk.bf16.mxu0 %vm705_vm1, %v2005_v25 }
 0x2f7   : > { %3379 = vmatmul.mubr.msk.bf16.gmra.mxu1 %vm705_vm1, %v2007_v41 }
 0x2f8   : > { %3382 = vmatprep.mubr.msk.bf16.mxu1 %vm705_vm1, %v2009_v1 }
 0x2fb   : > { %3349 = vmatmul.mubr.msk.bf16.gmra.mxu0 %vm705_vm1, %v2007_v41 }
 0x2ff   : > { %3383 = vmatmul.mubr.msk.bf16.gmra.mxu1 %vm705_vm1, %v2011_v9 }
 0x347   : > { %v3288_v58 = vpop.f32.mrf.mxu1 }
 0x349   : > { %v2091_v59 = vpop.f32.mrf.mxu1 }
 0x34b   : > { %v3289_v27 = vpop.f32.mrf.mxu1 }
 0x34d   : > { %v2094_v16 = vpop.f32.mrf.mxu1 }
 0x34f   : > { %v3292_v40 = vpop.f32.mrf.mxu1 }
 0x351   : > { %v2107_v32 = vpop.f32.mrf.mxu1 }
 0x353   : > { %v5167_v3 = vpop.f32.mrf.mxu1 }
 0x355   : > { %v5169_v56 = vpop.f32.mrf.mxu1 }
 0x357   : > { %v5171_v13 = vpop.f32.mrf.mxu1 }
 0x359   : > { %v5173_v24 = vpop.f32.mrf.mxu1 }
 0x35b   : > { %v5175_v28 = vpop.f32.mrf.mxu1 }
 0x35d   : > { %v5177_v31 = vpop.f32.mrf.mxu1 }
 0x35f   : > { %v5179_v47 = vpop.f32.mrf.mxu1 }
 0x361   : > { %v5181_v39 = vpop.f32.mrf.mxu1 }
 0x363   : > { %v5183_v29 = vpop.f32.mrf.mxu1 }
 0x365   : > { %v5185_v51 = vpop.f32.mrf.mxu1 }
 0x367   : > { %v5187_v20 = vpop.f32.mrf.mxu1 }
 0x369   : > { %v5189_v21 = vpop.f32.mrf.mxu1 }
 0x36b   : > { %v5191_v33 = vpop.f32.mrf.mxu1 }
 0x36d   : > { %v5193_v43 = vpop.f32.mrf.mxu1 }
 0x36f   : > { %v5195_v19 = vpop.f32.mrf.mxu1 }
 0x371   : > { %v5197_v5 = vpop.f32.mrf.mxu1 }
 0x373   : > { %v5199_v48 = vpop.f32.mrf.mxu1 }
 0x375   : > { %v5201_v49 = vpop.f32.mrf.mxu1 }
 0x377   : > { %v5203_v61 = vpop.f32.mrf.mxu1 }
 0x379   : > { %v5205_v30 = vpop.f32.mrf.mxu1 }
 0x37b   : > { %v5207_v62 = vpop.f32.mrf.mxu1 }
 0x37d   : > { %v5209_v12 = vpop.f32.mrf.mxu1 }
 0x37f   : > { %v5211_v4 = vpop.f32.mrf.mxu1 }
 0x381   : > { %v5213_v22 = vpop.f32.mrf.mxu1 }
 0x383   : > { %v5215_v34 = vpop.f32.mrf.mxu1  ;;  %v3322_v0 = vpop.f32.mrf.mxu0 }
 0x384   : > { %v2271_v10 = vadd.f32 %v3322_v0, %v3288_v58 }
 0x385   : > { %v5217_v2 = vpop.f32.mrf.mxu1  ;;  %v2262_v35 = vpop.f32.mrf.mxu0 }
 0x386   : > { %v2263_v60 = vadd.f32 %v2262_v35, %v2091_v59 }
 0x387   : > { %v3323_v53 = vpop.f32.mrf.mxu0  ;;  %v3356_v23 = vpop.f32.mrf.mxu1 }
 0x388   : > { %v2274_v42 = vadd.f32 %v3323_v53, %v3289_v27  ;;  %v5221_v38 = vadd.f32 %v3356_v23, %v2271_v10 }
 0x389   : > { %v2265_v18 = vpop.f32.mrf.mxu0  ;;  %v2436_v45 = vpop.f32.mrf.mxu1 }
 0x38a   : > { %v5219_v50 = vadd.f32 %v2436_v45, %v2263_v60  ;;  %v2266_v52 = vadd.f32 %v2265_v18, %v2094_v16  ;;  %v2667_v54 = vmul.f32 %v5221_v38, %v5221_v38  ;;  %v2598_v14 = vsel %vm605_vm15, %v5221_v38, 0.0 }
 0x38b   : > { %v3326_v11 = vpop.f32.mrf.mxu0  ;;  %v3357_v6 = vpop.f32.mrf.mxu1 }
 0x38c   : > { %v2665_v57 = vmul.f32 %v5219_v50, %v5219_v50  ;;  %v5225_v25 = vadd.f32 %v3357_v6, %v2274_v42  ;;  %v2595_v26 = vsel %vm605_vm15, %v5219_v50, 0.0  ;;  %v2287_v41 = vadd.f32 %v3326_v11, %v3292_v40 }
 0x38d   : > { %v2278_v55 = vpop.f32.mrf.mxu0  ;;  %v2439_v46 = vpop.f32.mrf.mxu1  ;;  %v2700_v53 = vsel %vm605_vm15, %v2667_v54, 0.0 }
 0x38e   : > { %v5227_v7 = vadd.f32 %v2439_v46, %v2266_v52  ;;  %v2279_v1 = vadd.f32 %v2278_v55, %v2107_v32  ;;  %v2697_v9 = vsel %vm605_vm15, %v2665_v57, 0.0  ;;  %v2668_v58 = vmul.f32 %v5225_v25, %v5225_v25 }
 0x38f   : > { %v3327_v36 = vpop.f32.mrf.mxu0  ;;  %v3360_v8 = vpop.f32.mrf.mxu1  ;;  %v2600_v23 = vsel %vm605_vm15, %v5225_v25, 0.0 }
 0x390   : > { %v2596_v44 = vsel %vm605_vm15, %v5227_v7, 0.0  ;;  %v2666_v17 = vmul.f32 %v5227_v7, %v5227_v7  ;;  %v5243_v0 = vadd.f32 %v3360_v8, %v2287_v41  ;;  %v2290_v60 = vadd.f32 %v3327_v36, %v5167_v3 }
 0x391   : > { %v2597_v63 = vadd.f32 %v2596_v44, %v2595_v26  ;;  %v2281_v15 = vpop.f32.mrf.mxu0  ;;  %v2452_v37 = vpop.f32.mrf.mxu1  ;;  %v2702_v52 = vsel %vm605_vm15, %v2668_v58, 0.0 }
 0x392   : > { %v2698_v59 = vsel %vm605_vm15, %v2666_v17, 0.0  ;;  %v5245_v35 = vadd.f32 %v2452_v37, %v2279_v1  ;;  %v2282_v18 = vadd.f32 %v2281_v15, %v5169_v56  ;;  %v2671_v3 = vmul.f32 %v5243_v0, %v5243_v0 }
 0x393   : > { %v2599_v27 = vadd.f32 %v2598_v14, %v2597_v63  ;;  %v2699_v16 = vadd.f32 %v2698_v59, %v2697_v9  ;;  %v3330_v40 = vpop.f32.mrf.mxu0  ;;  %v3361_v32 = vpop.f32.mrf.mxu1  ;;  %v2606_v1 = vsel %vm605_vm15, %v5243_v0, 0.0 }
 0x394   : > { %v2669_v11 = vmul.f32 %v5245_v35, %v5245_v35  ;;  %v2602_v55 = vsel %vm605_vm15, %v5245_v35, 0.0  ;;  %v5257_v46 = vadd.f32 %v3361_v32, %v2290_v60  ;;  %v2303_v9 = vadd.f32 %v3330_v40, %v5171_v13 }
 0x395   : > { %v2701_v45 = vadd.f32 %v2700_v53, %v2699_v16  ;;  %v2601_v10 = vadd.f32 %v2600_v23, %v2599_v27  ;;  %v2294_v6 = vpop.f32.mrf.mxu0  ;;  %v2455_v42 = vpop.f32.mrf.mxu1  ;;  %v2708_v23 = vsel %vm605_vm15, %v2671_v3, 0.0 }
 0x396   : > { %v5259_v57 = vadd.f32 %v2455_v42, %v2282_v18  ;;  %v2704_v26 = vsel %vm605_vm15, %v2669_v11, 0.0  ;;  %v2295_v44 = vadd.f32 %v2294_v6, %v5173_v24  ;;  %v2672_v58 = vmul.f32 %v5257_v46, %v5257_v46 }
 0x397   : > { %v2603_v56 = vadd.f32 %v2602_v55, %v2601_v10  ;;  %v2703_v36 = vadd.f32 %v2702_v52, %v2701_v45  ;;  %v3331_v8 = vpop.f32.mrf.mxu0  ;;  %v3364_v54 = vpop.f32.mrf.mxu1  ;;  %v2608_v60 = vsel %vm605_vm15, %v5257_v46, 0.0 }
 0x398   : > { %v2604_v17 = vsel %vm605_vm15, %v5259_v57, 0.0  ;;  %v2670_v41 = vmul.f32 %v5259_v57, %v5259_v57  ;;  %v5280_v18 = vadd.f32 %v3364_v54, %v2303_v9  ;;  %v2306_v45 = vadd.f32 %v3331_v8, %v5175_v28 }
 0x399   : > { %v2705_v63 = vadd.f32 %v2704_v26, %v2703_v36  ;;  %v2605_v15 = vadd.f32 %v2604_v17, %v2603_v56  ;;  %v2297_v37 = vpop.f32.mrf.mxu0  ;;  %v2468_v14 = vpop.f32.mrf.mxu1  ;;  %v2710_v52 = vsel %vm605_vm15, %v2672_v58, 0.0 }
 0x39a   : > { %v2706_v24 = vsel %vm605_vm15, %v2670_v41, 0.0  ;;  %v5275_v59 = vadd.f32 %v2468_v14, %v2295_v44  ;;  %v2298_v10 = vadd.f32 %v2297_v37, %v5177_v31  ;;  %v2675_v28 = vmul.f32 %v5280_v18, %v5280_v18 }
 0x39b   : > { %v2607_v27 = vadd.f32 %v2606_v1, %v2605_v15  ;;  %v2707_v16 = vadd.f32 %v2706_v24, %v2705_v63  ;;  %v3334_v32 = vpop.f32.mrf.mxu0  ;;  %v3365_v53 = vpop.f32.mrf.mxu1  ;;  %v2614_v14 = vsel %vm605_vm15, %v5280_v18, 0.0 }
 0x39c   : > { %v2673_v13 = vmul.f32 %v5275_v59, %v5275_v59  ;;  %v2610_v55 = vsel %vm605_vm15, %v5275_v59, 0.0  ;;  %v5289_v36 = vadd.f32 %v3365_v53, %v2306_v45  ;;  %v2319_v8 = vadd.f32 %v3334_v32, %v5179_v47 }
 0x39d   : > { %v2709_v40 = vadd.f32 %v2708_v23, %v2707_v16  ;;  %v2609_v11 = vadd.f32 %v2608_v60, %v2607_v27  ;;  %v2310_v6 = vpop.f32.mrf.mxu0  ;;  %v2471_v42 = vpop.f32.mrf.mxu1  ;;  %v2716_v60 = vsel %vm605_vm15, %v2675_v28, 0.0 }
 0x39e   : > { %v5291_v54 = vadd.f32 %v2471_v42, %v2298_v10  ;;  %v2712_v31 = vsel %vm605_vm15, %v2673_v13, 0.0  ;;  %v2311_v41 = vadd.f32 %v2310_v6, %v5181_v39  ;;  %v2676_v58 = vmul.f32 %v5289_v36, %v5289_v36 }
 0x39f   : > { %v2611_v3 = vadd.f32 %v2610_v55, %v2609_v11  ;;  %v2711_v56 = vadd.f32 %v2710_v52, %v2709_v40  ;;  %v3335_v26 = vpop.f32.mrf.mxu0  ;;  %v3368_v44 = vpop.f32.mrf.mxu1  ;;  %v2616_v13 = vsel %vm605_vm15, %v5289_v36, 0.0 }
 0x3a0   : > { %v2612_v1 = vsel %vm605_vm15, %v5291_v54, 0.0  ;;  %v2674_v63 = vmul.f32 %v5291_v54, %v5291_v54  ;;  %v5307_v24 = vadd.f32 %v3368_v44, %v2319_v8  ;;  %v2322_v40 = vadd.f32 %v3335_v26, %v5183_v29 }
 0x3a1   : > { %v2713_v17 = vadd.f32 %v2712_v31, %v2711_v56  ;;  %v2313_v15 = vpop.f32.mrf.mxu0  ;;  %v2484_v37 = vpop.f32.mrf.mxu1  ;;  %v2613_v9 = vadd.f32 %v2612_v1, %v2611_v3  ;;  %v2718_v55 = vsel %vm605_vm15, %v2676_v58, 0.0 }
 0x3a2   : > { %v2714_v47 = vsel %vm605_vm15, %v2674_v63, 0.0  ;;  %v5309_v39 = vadd.f32 %v2484_v37, %v2311_v41  ;;  %v2314_v23 = vadd.f32 %v2313_v15, %v5185_v51  ;;  %v2679_v51 = vmul.f32 %v5307_v24, %v5307_v24 }
 0x3a3   : > { %v3338_v27 = vpop.f32.mrf.mxu0  ;;  %v3369_v16 = vpop.f32.mrf.mxu1  ;;  %v2615_v32 = vadd.f32 %v2614_v14, %v2613_v9  ;;  %v2715_v53 = vadd.f32 %v2714_v47, %v2713_v17  ;;  %v2622_v58 = vsel %vm605_vm15, %v5307_v24, 0.0 }
 0x3a4   : > { %v2677_v45 = vmul.f32 %v5309_v39, %v5309_v39  ;;  %v2618_v3 = vsel %vm605_vm15, %v5309_v39, 0.0  ;;  %v5325_v56 = vadd.f32 %v3369_v16, %v2322_v40  ;;  %v2335_v37 = vadd.f32 %v3338_v27, %v5187_v20 }
 0x3a5   : > { %v2326_v10 = vpop.f32.mrf.mxu0  ;;  %v2487_v11 = vpop.f32.mrf.mxu1  ;;  %v2717_v6 = vadd.f32 %v2716_v60, %v2715_v53  ;;  %v2617_v42 = vadd.f32 %v2616_v13, %v2615_v32 }
 0x3a6   : > { %v5318_v52 = vadd.f32 %v2487_v11, %v2314_v23  ;;  %v2720_v17 = vsel %vm605_vm15, %v2677_v45, 0.0  ;;  %v2327_v41 = vadd.f32 %v2326_v10, %v5189_v21  ;;  %v2680_v47 = vmul.f32 %v5325_v56, %v5325_v56 }
 0x3a7   : > { %v3339_v29 = vpop.f32.mrf.mxu0  ;;  %v3372_v26 = vpop.f32.mrf.mxu1  ;;  %v2619_v44 = vadd.f32 %v2618_v3, %v2617_v42  ;;  %v2719_v28 = vadd.f32 %v2718_v55, %v2717_v6  ;;  %v2724_v21 = vsel %vm605_vm15, %v2679_v51, 0.0  ;;  %v2624_v20 = vsel %vm605_vm15, %v5325_v56, 0.0 }
 0x3a8   : > { %v2620_v31 = vsel %vm605_vm15, %v5318_v52, 0.0  ;;  %v2678_v8 = vmul.f32 %v5318_v52, %v5318_v52  ;;  %v5342_v13 = vadd.f32 %v3372_v26, %v2335_v37  ;;  %v2338_v27 = vadd.f32 %v3339_v29, %v5191_v33 }
 0x3a9   : > { %v2329_v1 = vpop.f32.mrf.mxu0  ;;  %v2500_v63 = vpop.f32.mrf.mxu1  ;;  %v2721_v15 = vadd.f32 %v2720_v17, %v2719_v28  ;;  %v2621_v14 = vadd.f32 %v2620_v31, %v2619_v44  ;;  %v2726_v55 = vsel %vm605_vm15, %v2680_v47, 0.0 }
 0x3aa   : > { %v2722_v9 = vsel %vm605_vm15, %v2678_v8, 0.0  ;;  %v5339_v16 = vadd.f32 %v2500_v63, %v2327_v41  ;;  %v2330_v40 = vadd.f32 %v2329_v1, %v5193_v43  ;;  %v2683_v43 = vmul.f32 %v5342_v13, %v5342_v13 }
 0x3ab   : > { %v3342_v32 = vpop.f32.mrf.mxu0  ;;  %v3373_v53 = vpop.f32.mrf.mxu1  ;;  %v2623_v23 = vadd.f32 %v2622_v58, %v2621_v14  ;;  %v2723_v60 = vadd.f32 %v2722_v9, %v2721_v15  ;;  %v2630_v58 = vsel %vm605_vm15, %v5342_v13, 0.0 }
 0x3ac   : > { %v2681_v45 = vmul.f32 %v5339_v16, %v5339_v16  ;;  %v2626_v51 = vsel %vm605_vm15, %v5339_v16, 0.0  ;;  %v5353_v3 = vadd.f32 %v3373_v53, %v2338_v27  ;;  %v2351_v37 = vadd.f32 %v3342_v32, %v5195_v19 }
 0x3ad   : > { %v2342_v10 = vpop.f32.mrf.mxu0  ;;  %v2503_v11 = vpop.f32.mrf.mxu1  ;;  %v2725_v6 = vadd.f32 %v2724_v21, %v2723_v60  ;;  %v2625_v42 = vadd.f32 %v2624_v20, %v2623_v23  ;;  %v2732_v23 = vsel %vm605_vm15, %v2683_v43, 0.0 }
 0x3ae   : > { %v5355_v26 = vadd.f32 %v2503_v11, %v2330_v40  ;;  %v2343_v31 = vadd.f32 %v2342_v10, %v5197_v5  ;;  %v2728_v8 = vsel %vm605_vm15, %v2681_v45, 0.0  ;;  %v2684_v5 = vmul.f32 %v5353_v3, %v5353_v3 }
 0x3af   : > { %v3343_v44 = vpop.f32.mrf.mxu0  ;;  %v3376_v33 = vpop.f32.mrf.mxu1  ;;  %v2627_v29 = vadd.f32 %v2626_v51, %v2625_v42  ;;  %v2727_v28 = vadd.f32 %v2726_v55, %v2725_v6  ;;  %v2632_v19 = vsel %vm605_vm15, %v5353_v3, 0.0 }
 0x3b0   : > { %v2628_v17 = vsel %vm605_vm15, %v5355_v26, 0.0  ;;  %v2682_v41 = vmul.f32 %v5355_v26, %v5355_v26  ;;  %v5374_v27 = vadd.f32 %v3376_v33, %v2351_v37  ;;  %v2354_v32 = vadd.f32 %v3343_v44, %v5199_v48 }
 0x3b1   : > { %v2345_v1 = vpop.f32.mrf.mxu0  ;;  %v2516_v63 = vpop.f32.mrf.mxu1  ;;  %v2729_v15 = vadd.f32 %v2728_v8, %v2727_v28  ;;  %v2629_v14 = vadd.f32 %v2628_v17, %v2627_v29  ;;  %v2734_v55 = vsel %vm605_vm15, %v2684_v5, 0.0 }
 0x3b2   : > { %v5366_v9 = vadd.f32 %v2516_v63, %v2343_v31  ;;  %v2730_v47 = vsel %vm605_vm15, %v2682_v41, 0.0  ;;  %v2346_v40 = vadd.f32 %v2345_v1, %v5201_v49  ;;  %v2687_v49 = vmul.f32 %v5374_v27, %v5374_v27 }
 0x3b3   : > { %v3346_v53 = vpop.f32.mrf.mxu0  ;;  %v3377_v21 = vpop.f32.mrf.mxu1  ;;  %v2631_v60 = vadd.f32 %v2630_v58, %v2629_v14  ;;  %v2731_v20 = vadd.f32 %v2730_v47, %v2729_v15  ;;  %v2638_v37 = vsel %vm605_vm15, %v5374_v27, 0.0 }
 0x3b4   : > { %v2685_v45 = vmul.f32 %v5366_v9, %v5366_v9  ;;  %v2634_v51 = vsel %vm605_vm15, %v5366_v9, 0.0  ;;  %v5385_v33 = vadd.f32 %v3377_v21, %v2354_v32  ;;  %v2367_v31 = vadd.f32 %v3346_v53, %v5203_v61 }
 0x3b5   : > { %v2358_v10 = vpop.f32.mrf.mxu0  ;;  %v2519_v11 = vpop.f32.mrf.mxu1  ;;  %v2733_v6 = vadd.f32 %v2732_v23, %v2731_v20  ;;  %v2633_v42 = vadd.f32 %v2632_v19, %v2631_v60  ;;  %v2740_v19 = vsel %vm605_vm15, %v2687_v49, 0.0 }
 0x3b6   : > { %v5387_v43 = vadd.f32 %v2519_v11, %v2346_v40  ;;  %v2736_v8 = vsel %vm605_vm15, %v2685_v45, 0.0  ;;  %v2359_v17 = vadd.f32 %v2358_v10, %v5205_v30  ;;  %v2688_v61 = vmul.f32 %v5385_v33, %v5385_v33 }
 0x3b7   : > { %v3347_v29 = vpop.f32.mrf.mxu0  ;;  %v3380_v48 = vpop.f32.mrf.mxu1  ;;  %v2635_v44 = vadd.f32 %v2634_v51, %v2633_v42  ;;  %v2735_v28 = vadd.f32 %v2734_v55, %v2733_v6  ;;  %v2640_v32 = vsel %vm605_vm15, %v5385_v33, 0.0 }
 0x3b8   : > { %v2636_v41 = vsel %vm605_vm15, %v5387_v43, 0.0  ;;  %v2686_v1 = vmul.f32 %v5387_v43, %v5387_v43  ;;  %v5403_v47 = vadd.f32 %v3380_v48, %v2367_v31  ;;  %v2370_v40 = vadd.f32 %v3347_v29, %v5207_v62 }
 0x3b9   : > { %v2361_v63 = vpop.f32.mrf.mxu0  ;;  %v2532_v15 = vpop.f32.mrf.mxu1  ;;  %v2737_v14 = vadd.f32 %v2736_v8, %v2735_v28  ;;  %v2637_v58 = vadd.f32 %v2636_v41, %v2635_v44  ;;  %v2742_v51 = vsel %vm605_vm15, %v2688_v61, 0.0 }
 0x3ba   : > { %v2738_v5 = vsel %vm605_vm15, %v2686_v1, 0.0  ;;  %v5405_v30 = vadd.f32 %v2532_v15, %v2359_v17  ;;  %v2362_v20 = vadd.f32 %v2361_v63, %v5209_v12  ;;  %v2691_v12 = vmul.f32 %v5403_v47, %v5403_v47 }
 0x3bb   : > { %v3350_v53 = vpop.f32.mrf.mxu0  ;;  %v3381_v21 = vpop.f32.mrf.mxu1  ;;  %v2639_v23 = vadd.f32 %v2638_v37, %v2637_v58  ;;  %v2739_v60 = vadd.f32 %v2738_v5, %v2737_v14  ;;  %v2646_v58 = vsel %vm605_vm15, %v5403_v47, 0.0 }
 0x3bc   : > { %v2689_v45 = vmul.f32 %v5405_v30, %v5405_v30  ;;  %v2642_v48 = vsel %vm605_vm15, %v5405_v30, 0.0  ;;  %v5421_v49 = vadd.f32 %v3381_v21, %v2370_v40  ;;  %v2383_v61 = vadd.f32 %v3350_v53, %v5211_v4 }
 0x3bd   : > { %v2374_v10 = vpop.f32.mrf.mxu0  ;;  %v2535_v11 = vpop.f32.mrf.mxu1  ;;  %v2741_v6 = vadd.f32 %v2740_v19, %v2739_v60  ;;  %v2641_v42 = vadd.f32 %v2640_v32, %v2639_v23  ;;  %v2748_v60 = vsel %vm605_vm15, %v2691_v12, 0.0 }
 0x3be   : > { %v5414_v55 = vadd.f32 %v2535_v11, %v2362_v20  ;;  %v2744_v17 = vsel %vm605_vm15, %v2689_v45, 0.0  ;;  %v2375_v41 = vadd.f32 %v2374_v10, %v5213_v22  ;;  %v2692_v5 = vmul.f32 %v5421_v49, %v5421_v49 }
 0x3bf   : > { %v3351_v62 = vpop.f32.mrf.mxu0  ;;  %v3384_v29 = vpop.f32.mrf.mxu1  ;;  %v2643_v44 = vadd.f32 %v2642_v48, %v2641_v42  ;;  %v2743_v28 = vadd.f32 %v2742_v51, %v2741_v6  ;;  %v2648_v22 = vsel %vm605_vm15, %v5421_v49, 0.0 }
 0x3c0   : > { %v2644_v31 = vsel %vm605_vm15, %v5414_v55, 0.0  ;;  %v2690_v8 = vmul.f32 %v5414_v55, %v5414_v55  ;;  %v2386_v32 = vadd.f32 %v3351_v62, %v5215_v34  ;;  %v5441_v40 = vadd.f32 %v3384_v29, %v2383_v61 }
 0x3c1   : > { %v2548_v1 = vpop.f32.mrf.mxu1  ;;  %v2745_v63 = vadd.f32 %v2744_v17, %v2743_v28  ;;  %v2645_v15 = vadd.f32 %v2644_v31, %v2643_v44  ;;  %v2377_v14 = vpop.f32.mrf.mxu0  ;;  %v2750_v6 = vsel %vm605_vm15, %v2692_v5, 0.0 }
 0x3c2   : > { %v2746_v37 = vsel %vm605_vm15, %v2690_v8, 0.0  ;;  %v5435_v21 = vadd.f32 %v2548_v1, %v2375_v41  ;;  %v2378_v45 = vadd.f32 %v2377_v14, %v5217_v2  ;;  %v2695_v2 = vmul.f32 %v5441_v40, %v5441_v40 }
 0x3c3   : > { %v3385_v23 = vpop.f32.mrf.mxu1  ;;  %v2647_v20 = vadd.f32 %v2646_v58, %v2645_v15  ;;  %v2747_v19 = vadd.f32 %v2746_v37, %v2745_v63  ;;  %v2654_v8 = vsel %vm605_vm15, %v5441_v40, 0.0 }
 0x3c4   : > { %v2693_v4 = vmul.f32 %v5435_v21, %v5435_v21  ;;  %v2650_v42 = vsel %vm605_vm15, %v5435_v21, 0.0  ;;  %v5449_v51 = vadd.f32 %v3385_v23, %v2386_v32  ;;  %v2756_v15 = vsel %vm605_vm15, %v2695_v2, 0.0 }
 0x3c5   : > { %v2551_v53 = vpop.f32.mrf.mxu1  ;;  %v2749_v10 = vadd.f32 %v2748_v60, %v2747_v19  ;;  %v2649_v11 = vadd.f32 %v2648_v22, %v2647_v20 }
 0x3c6   : > { %v5451_v12 = vadd.f32 %v2551_v53, %v2378_v45  ;;  %v2752_v62 = vsel %vm605_vm15, %v2693_v4, 0.0  ;;  %v2696_v17 = vmul.f32 %v5449_v51, %v5449_v51  ;;  %v2656_v37 = vsel %vm605_vm15, %v5449_v51, 0.0 }
 0x3c7   : > { %v2651_v34 = vadd.f32 %v2650_v42, %v2649_v11  ;;  %v2751_v48 = vadd.f32 %v2750_v6, %v2749_v10 }
 0x3c8   : > { %v2652_v29 = vsel %vm605_vm15, %v5451_v12, 0.0  ;;  %v2694_v44 = vmul.f32 %v5451_v12, %v5451_v12  ;;  %v2758_v61 = vsel %vm605_vm15, %v2696_v17, 0.0 }
 0x3c9   : > { %v2753_v28 = vadd.f32 %v2752_v62, %v2751_v48  ;;  %v2653_v31 = vadd.f32 %v2652_v29, %v2651_v34 }
 0x3ca   : > { %v2754_v41 = vsel %vm605_vm15, %v2694_v44, 0.0 }
 0x3cb   : > { %v2655_v1 = vadd.f32 %v2654_v8, %v2653_v31  ;;  %v2755_v63 = vadd.f32 %v2754_v41, %v2753_v28 }
 0x3cd   : > { %v2657_v14 = vadd.f32 %v2656_v37, %v2655_v1  ;;  %v2757_v58 = vadd.f32 %v2756_v15, %v2755_v63 }
 0x3cf   : > { %v2658_v5 = vrot.slane %v2657_v14, 4  ;;  %v2759_v23 = vadd.f32 %v2758_v61, %v2757_v58 }
 0x3d1   : > { %v2659_v60 = vadd.f32 %v2658_v5, %v2657_v14  ;;  %v2760_v22 = vrot.slane %v2759_v23, 4 }
 0x3d3   : > { %v2660_v20 = vrot.slane %v2659_v60, 2  ;;  %v2761_v19 = vadd.f32 %v2760_v22, %v2759_v23 }
 0x3d5   : > { %v2661_v32 = vadd.f32 %v2660_v20, %v2659_v60  ;;  %v2762_v45 = vrot.slane %v2761_v19, 2 }
 0x3d7   : > { %v2662_v4 = vrot.slane %v2661_v32, 1  ;;  %v2763_v53 = vadd.f32 %v2762_v45, %v2761_v19 }
 0x3d9   : > { %v2663_v10 = vadd.f32 %v2662_v4, %v2661_v32  ;;  %v2764_v11 = vrot.slane %v2763_v53, 1 }
 0x3db   : > { %v5469_v6 = vmul.f32 0.00390625, %v2663_v10  ;;  %v2765_v42 = vadd.f32 %v2764_v11, %v2763_v53 }
 0x3dd   : > { %v2766_v34 = vmul.f32 0.00390625, %v2765_v42  ;;  %v2767_v48 = vmul.f32 %v5469_v6, %v5469_v6  ;;  %v2779_v62 = vsub.f32 %v5291_v54, %v5469_v6  ;;  %v2782_v29 = vsub.f32 %v5309_v39, %v5469_v6 }
 0x3de   : > { %v2783_v28 = vsub.f32 %v5318_v52, %v5469_v6  ;;  %v2784_v31 = vsub.f32 %v5307_v24, %v5469_v6  ;;  %v2785_v8 = vsub.f32 %v5325_v56, %v5469_v6  ;;  %v2786_v17 = vsub.f32 %v5339_v16, %v5469_v6 }
 0x3df   : > { %v2768_v2 = vsub.f32 %v2766_v34, %v2767_v48  ;;  %v2787_v41 = vsub.f32 %v5355_v26, %v5469_v6  ;;  %v2788_v54 = vsub.f32 %v5342_v13, %v5469_v6  ;;  %v2789_v39 = vsub.f32 %v5353_v3, %v5469_v6 }
 0x3e0   : > { %v2790_v52 = vsub.f32 %v5366_v9, %v5469_v6  ;;  %v2792_v24 = vsub.f32 %v5374_v27, %v5469_v6  ;;  %v2793_v56 = vsub.f32 %v5385_v33, %v5469_v6  ;;  %v2794_v16 = vsub.f32 %v5405_v30, %v5469_v6 }
 0x3e1   : > { %v2769_v44 = vmax.f32 %v2768_v2, 0.0  ;;  %v2796_v26 = vsub.f32 %v5403_v47, %v5469_v6  ;;  %v2797_v13 = vsub.f32 %v5421_v49, %v5469_v6  ;;  %v2798_v3 = vsub.f32 %v5435_v21, %v5469_v6 }
 0x3e2   : > { %v2800_v9 = vsub.f32 %v5441_v40, %v5469_v6  ;;  %v2801_v27 = vsub.f32 %v5449_v51, %v5469_v6  ;;  %v2770_v33 = vsub.f32 %v5219_v50, %v5469_v6  ;;  %v2771_v47 = vsub.f32 %v5227_v7, %v5469_v6 }
 0x3e3   : > { %v2802_v1 = vadd.f32 1e-05, %v2769_v44  ;;  %v2772_v30 = vsub.f32 %v5221_v38, %v5469_v6  ;;  %v2773_v49 = vsub.f32 %v5225_v25, %v5469_v6  ;;  %v2774_v21 = vsub.f32 %v5245_v35, %v5469_v6 }
 0x3e4   : > { %v2775_v40 = vsub.f32 %v5259_v57, %v5469_v6  ;;  %v2776_v51 = vsub.f32 %v5243_v0, %v5469_v6  ;;  %v2777_v50 = vsub.f32 %v5257_v46, %v5469_v6  ;;  %v2778_v7 = vsub.f32 %v5275_v59, %v5469_v6 }
 0x3e5   : > { %3412 = vrsqrt.f32 %v2802_v1  ;;  %v2780_v38 = vsub.f32 %v5280_v18, %v5469_v6  ;;  %v2781_v25 = vsub.f32 %v5289_v36, %v5469_v6  ;;  %v2791_v35 = vsub.f32 %v5387_v43, %v5469_v6  ;;  %v3422_v1 = vld [vmem:[%s3501_s19 + $0x40] sm:$0xff] }
 0x3e6   : > { %v2795_v57 = vsub.f32 %v5414_v55, %v5469_v6  ;;  %v2799_v0 = vsub.f32 %v5451_v12, %v5469_v6 }
 0x3f2   : > { %v3413_v63 = vpop.eup %3412 }
 0x3f3   : > { %v2804_v46 = vmul.f32 %v3413_v63, %v2770_v33  ;;  %v2805_v15 = vmul.f32 %v3413_v63, %v2771_v47  ;;  %v2806_v37 = vmul.f32 %v3413_v63, %v2772_v30  ;;  %v2807_v59 = vmul.f32 %v3413_v63, %v2773_v49  ;;  %v3423_v47 = vld [vmem:[%s3501_s19 + $0x48] sm:$0xff]  ;;  %v3424_v49 = vld [vmem:[%s3501_s19 + $0x50] sm:$0xff] }
 0x3f4   : > { %v2808_v14 = vmul.f32 %v3413_v63, %v2774_v21  ;;  %v2809_v58 = vmul.f32 %v3413_v63, %v2775_v40  ;;  %v2810_v18 = vmul.f32 %v3413_v63, %v2776_v51  ;;  %v2811_v61 = vmul.f32 %v3413_v63, %v2777_v50  ;;  %v3425_v40 = vld [vmem:[%s3501_s19 + $0x58] sm:$0xff]  ;;  %v3426_v50 = vld [vmem:[%s3501_s19 + $0x60] sm:$0xff] }
 0x3f5   : > { %v2812_v5 = vmul.f32 %v3413_v63, %v2778_v7  ;;  %v2813_v23 = vmul.f32 %v3413_v63, %v2779_v62  ;;  %v2814_v36 = vmul.f32 %v3413_v63, %v2780_v38  ;;  %v2815_v60 = vmul.f32 %v3413_v63, %v2781_v25  ;;  %v3427_v38 = vld [vmem:[%s3501_s19 + $0x68] sm:$0xff]  ;;  %v3428_v25 = vld [vmem:[%s3501_s19 + $0x70] sm:$0xff] }
 0x3f6   : > { %v2816_v22 = vmul.f32 %v3413_v63, %v2782_v29  ;;  %v2817_v43 = vmul.f32 %v3413_v63, %v2783_v28  ;;  %v2818_v20 = vmul.f32 %v3413_v63, %v2784_v31  ;;  %v2819_v55 = vmul.f32 %v3413_v63, %v2785_v8  ;;  %v3414_v28 = vld [vmem:[%s3501_s19] sm:$0xff]  ;;  %v3415_v8 = vld [vmem:[%s3501_s19 + $0x8] sm:$0xff] }
 0x3f7   : > { %v2820_v19 = vmul.f32 %v3413_v63, %v2786_v17  ;;  %v2821_v32 = vmul.f32 %v3413_v63, %v2787_v41  ;;  %v2822_v12 = vmul.f32 %v3413_v63, %v2788_v54  ;;  %v2823_v45 = vmul.f32 %v3413_v63, %v2789_v39  ;;  %v3416_v41 = vld [vmem:[%s3501_s19 + $0x10] sm:$0xff]  ;;  %v3417_v39 = vld [vmem:[%s3501_s19 + $0x18] sm:$0xff] }
 0x3f8   : > { %v5537_v4 = vmul.f32 %v3413_v63, %v2790_v52  ;;  %v5539_v53 = vmul.f32 %v3413_v63, %v2791_v35  ;;  %v5541_v10 = vmul.f32 %v3413_v63, %v2792_v24  ;;  %v5543_v11 = vmul.f32 %v3413_v63, %v2793_v56  ;;  %v3418_v24 = vld [vmem:[%s3501_s19 + $0x20] sm:$0xff] }
 0x3f9   : > { %v5545_v6 = vmul.f32 %v3413_v63, %v2794_v16  ;;  %v5547_v42 = vmul.f32 %v3413_v63, %v2795_v57  ;;  %v5549_v34 = vmul.f32 %v3413_v63, %v2796_v26  ;;  %v5551_v48 = vmul.f32 %v3413_v63, %v2797_v13  ;;  %v3419_v16 = vld [vmem:[%s3501_s19 + $0x28] sm:$0xff]  ;;  %v3420_v13 = vld [vmem:[%s3501_s19 + $0x30] sm:$0xff]  ;;  %v3429_v57 = vld [vmem:[%s3501_s19 + $0x78] sm:$0xff] }
 0x3fa   : > { %v5560_v2 = vmul.f32 %v3413_v63, %v2798_v3  ;;  %v5562_v62 = vmul.f32 %v3413_v63, %v2799_v0  ;;  %v5564_v29 = vmul.f32 %v3413_v63, %v2800_v9  ;;  %v5566_v44 = vmul.f32 %v3413_v63, %v2801_v27  ;;  %v3421_v9 = vld [vmem:[%s3501_s19 + $0x38] sm:$0xff] }
 0x3fb   : > { %v2836_v31 = vadd.f32 %v3414_v28, %v2804_v46  ;;  %v2837_v17 = vadd.f32 %v3415_v8, %v2805_v15  ;;  %v2838_v54 = vadd.f32 %v3416_v41, %v2806_v37  ;;  %v2839_v52 = vadd.f32 %v3417_v39, %v2807_v59  ;;  %v3430_v46 = vld [vmem:[%s3501_s19 + $0x80] sm:$0xff]  ;;  %v3431_v37 = vld [vmem:[%s3501_s19 + $0x88] sm:$0xff]  ;;  %v3444_v28 = vld [vmem:[%s3501_s19 + $0xf0] sm:$0xff] }
 0x3fc   : > { %v2840_v56 = vadd.f32 %v3418_v24, %v2808_v14  ;;  %v2841_v26 = vadd.f32 %v3419_v16, %v2809_v58  ;;  %v2842_v3 = vadd.f32 %v3420_v13, %v2810_v18  ;;  %v2843_v27 = vadd.f32 %v3421_v9, %v2811_v61  ;;  %v3432_v14 = vld [vmem:[%s3501_s19 + $0x90] sm:$0xff]  ;;  %v3433_v18 = vld [vmem:[%s3501_s19 + $0x98] sm:$0xff] }
 0x3fd   : > { %v2844_v33 = vadd.f32 %v3422_v1, %v2812_v5  ;;  %v2845_v30 = vadd.f32 %v3423_v47, %v2813_v23  ;;  %v2846_v21 = vadd.f32 %v3424_v49, %v2814_v36  ;;  %v2847_v51 = vadd.f32 %v3425_v40, %v2815_v60  ;;  %2868 = vst.msk [vmem:[%s5558_s7] sm:$0xff] %vm605_vm15, %v2836_v31  ;;  %v3434_v5 = vld [vmem:[%s3501_s19 + $0xa0] sm:$0xff]  ;;  %v3435_v36 = vld [vmem:[%s3501_s19 + $0xa8] sm:$0xff]  ;;  %v3445_v8 = vld [vmem:[%s3501_s19 + $0xf8] sm:$0xff] }
 0x3fe   : > { %2869 = vst.msk [vmem:[%s5558_s7 + $0x8] sm:$0xff] %vm605_vm15, %v2837_v17  ;;  %2870 = vst.msk [vmem:[%s5558_s7 + $0x10] sm:$0xff] %vm605_vm15, %v2838_v54  ;;  %v2848_v7 = vadd.f32 %v3426_v50, %v2816_v22  ;;  %v2849_v63 = vadd.f32 %v3427_v38, %v2817_v43  ;;  %v2850_v35 = vadd.f32 %v3428_v25, %v2818_v20  ;;  %v3436_v22 = vld [vmem:[%s3501_s19 + $0xb0] sm:$0xff]  ;;  %v3437_v20 = vld [vmem:[%s3501_s19 + $0xb8] sm:$0xff] }
 0x3ff   : > { %2871 = vst.msk [vmem:[%s5558_s7 + $0x18] sm:$0xff] %vm605_vm15, %v2839_v52  ;;  %v2851_v0 = vadd.f32 %v3429_v57, %v2819_v55  ;;  %2872 = vst.msk [vmem:[%s5558_s7 + $0x20] sm:$0xff] %vm605_vm15, %v2840_v56  ;;  %v2852_v15 = vadd.f32 %v3430_v46, %v2820_v19  ;;  %v2853_v59 = vadd.f32 %v3431_v37, %v2821_v32  ;;  %v3438_v19 = vld [vmem:[%s3501_s19 + $0xc0] sm:$0xff] }
 0x400   : > { %2873 = vst.msk [vmem:[%s5558_s7 + $0x28] sm:$0xff] %vm605_vm15, %v2841_v26  ;;  %2874 = vst.msk [vmem:[%s5558_s7 + $0x30] sm:$0xff] %vm605_vm15, %v2842_v3  ;;  %v2854_v58 = vadd.f32 %v3432_v14, %v2822_v12  ;;  %v2855_v61 = vadd.f32 %v3433_v18, %v2823_v45  ;;  %v2856_v23 = vadd.f32 %v3434_v5, %v5537_v4  ;;  %v3439_v12 = vld [vmem:[%s3501_s19 + $0xc8] sm:$0xff]  ;;  %v3440_v4 = vld [vmem:[%s3501_s19 + $0xd0] sm:$0xff] }
 0x401   : > { %2875 = vst.msk [vmem:[%s5558_s7 + $0x38] sm:$0xff] %vm605_vm15, %v2843_v27  ;;  %2876 = vst.msk [vmem:[%s5558_s7 + $0x40] sm:$0xff] %vm605_vm15, %v2844_v33  ;;  %v2857_v60 = vadd.f32 %v3435_v36, %v5539_v53  ;;  %v2858_v43 = vadd.f32 %v3436_v22, %v5541_v10  ;;  %v2859_v55 = vadd.f32 %v3437_v20, %v5543_v11  ;;  %v3441_v10 = vld [vmem:[%s3501_s19 + $0xd8] sm:$0xff] }
 0x402   : > { %2877 = vst.msk [vmem:[%s5558_s7 + $0x48] sm:$0xff] %vm605_vm15, %v2845_v30  ;;  %2878 = vst.msk [vmem:[%s5558_s7 + $0x50] sm:$0xff] %vm605_vm15, %v2846_v21  ;;  %v2860_v32 = vadd.f32 %v3438_v19, %v5545_v6  ;;  %v2861_v45 = vadd.f32 %v3439_v12, %v5547_v42  ;;  %v2862_v53 = vadd.f32 %v3440_v4, %v5549_v34  ;;  %v3442_v6 = vld [vmem:[%s3501_s19 + $0xe0] sm:$0xff]  ;;  %v3443_v34 = vld [vmem:[%s3501_s19 + $0xe8] sm:$0xff] }
 0x403   : > { %2879 = vst.msk [vmem:[%s5558_s7 + $0x58] sm:$0xff] %vm605_vm15, %v2847_v51  ;;  %2880 = vst.msk [vmem:[%s5558_s7 + $0x60] sm:$0xff] %vm605_vm15, %v2848_v7  ;;  %v2863_v11 = vadd.f32 %v3441_v10, %v5551_v48  ;;  %v2864_v42 = vadd.f32 %v3442_v6, %v5560_v2  ;;  %v2865_v48 = vadd.f32 %v3443_v34, %v5562_v62 }
 0x404   : > { %2881 = vst.msk [vmem:[%s5558_s7 + $0x68] sm:$0xff] %vm605_vm15, %v2849_v63  ;;  %2882 = vst.msk [vmem:[%s5558_s7 + $0x70] sm:$0xff] %vm605_vm15, %v2850_v35  ;;  %v2866_v31 = vadd.f32 %v3444_v28, %v5564_v29  ;;  %v2867_v17 = vadd.f32 %v3445_v8, %v5566_v44 }
 0x405   : > { %2883 = vst.msk [vmem:[%s5558_s7 + $0x78] sm:$0xff] %vm605_vm15, %v2851_v0  ;;  %2884 = vst.msk [vmem:[%s5558_s7 + $0x80] sm:$0xff] %vm605_vm15, %v2852_v15 }
 0x406   : > { %2885 = vst.msk [vmem:[%s5558_s7 + $0x88] sm:$0xff] %vm605_vm15, %v2853_v59  ;;  %2886 = vst.msk [vmem:[%s5558_s7 + $0x90] sm:$0xff] %vm605_vm15, %v2854_v58 }
 0x407   : > { %2887 = vst.msk [vmem:[%s5558_s7 + $0x98] sm:$0xff] %vm605_vm15, %v2855_v61  ;;  %2888 = vst.msk [vmem:[%s5558_s7 + $0xa0] sm:$0xff] %vm605_vm15, %v2856_v23 }
 0x408   : > { %2889 = vst.msk [vmem:[%s5558_s7 + $0xa8] sm:$0xff] %vm605_vm15, %v2857_v60  ;;  %2890 = vst.msk [vmem:[%s5558_s7 + $0xb0] sm:$0xff] %vm605_vm15, %v2858_v43 }
 0x409   : > { %2891 = vst.msk [vmem:[%s5558_s7 + $0xb8] sm:$0xff] %vm605_vm15, %v2859_v55  ;;  %2892 = vst.msk [vmem:[%s5558_s7 + $0xc0] sm:$0xff] %vm605_vm15, %v2860_v32 }
 0x40a   : > { %2893 = vst.msk [vmem:[%s5558_s7 + $0xc8] sm:$0xff] %vm605_vm15, %v2861_v45  ;;  %2894 = vst.msk [vmem:[%s5558_s7 + $0xd0] sm:$0xff] %vm605_vm15, %v2862_v53 }
 0x40b   : > { %2895 = vst.msk [vmem:[%s5558_s7 + $0xd8] sm:$0xff] %vm605_vm15, %v2863_v11  ;;  %2896 = vst.msk [vmem:[%s5558_s7 + $0xe0] sm:$0xff] %vm605_vm15, %v2864_v42 }
 0x40c   : > { %2897 = vst.msk [vmem:[%s5558_s7 + $0xe8] sm:$0xff] %vm605_vm15, %v2865_v48  ;;  %2898 = vst.msk [vmem:[%s5558_s7 + $0xf0] sm:$0xff] %vm605_vm15, %v2866_v31 }
 0x40d   : > { %2899 = vst.msk [vmem:[%s5558_s7 + $0xf8] sm:$0xff] %vm605_vm15, %v2867_v17 }
 0x40e PF: > { %s13_s12 = sadd.s32 1, %s3452_s12  }
 0x40f   : > { %p10_p4 = scmp.ge.s32.totalorder %s13_s12, 4  }
 0x411   :  { %12 = sbr.rel (!%p10_p4) target bundleno = 1 (0x1), region = 66 }

</bundles_post_ra>
